<compile_context>
chip_gen: v7x
topology: tpu7x:2x2x1
jax: 0.10.0
libtpu: 0.0.40
codegen_flags: <defaults>
</compile_context>

<pallas_src>
import functools

import jax
import jax.numpy as jnp
from jax.experimental import pallas as pl
from jax.experimental.pallas import tpu as pltpu

TM = 256    # output-row (node) tile
TK = 512    # contraction (neighbor) tile  (TM divides TK -> single padding multiple)
LANE = 128  # feature dims padded to lane-dense multiples of 128


def _round_up(v, m):
    return ((v + m - 1) // m) * m


def _pad2d(x, rows, cols):
    r, c = x.shape
    return jnp.pad(x, ((0, rows - r), (0, cols - c)))


# --------------------------------------------------------------------------
# Fused GCNConv layer kernel:  out = [relu]( (A_hat @ X) @ W + b )
# Grid = (row tiles [parallel], contraction tiles [arbitrary, last]).
# --------------------------------------------------------------------------
def _gcn_layer_kernel(a_ref, x_ref, w_ref, b_ref, o_ref, acc_ref, *, apply_relu):
    k = pl.program_id(1)

    @pl.when(k == 0)
    def _():
        acc_ref[...] = jnp.zeros_like(acc_ref)

    # S += A_tile @ X_ktile   (bf16 MXU operands, f32 accumulation)
    acc_ref[...] += jnp.dot(
        a_ref[...], x_ref[...], preferred_element_type=jnp.float32
    )

    @pl.when(k == pl.num_programs(1) - 1)
    def _():
        s = acc_ref[...].astype(jnp.bfloat16)           # MXU operand for W matmul
        out = jnp.dot(s, w_ref[...], preferred_element_type=jnp.float32)
        out = out + b_ref[...].astype(jnp.float32)
        if apply_relu:
            out = jnp.maximum(out, 0.0)
        o_ref[...] = out.astype(o_ref.dtype)


def gcn_layer(a_hat, x, w, b, *, apply_relu, out_dtype):
    """One GCNConv layer on padded, lane-dense bf16 operands."""
    n_pad = a_hat.shape[0]
    f_in = x.shape[1]
    f_out = w.shape[1]
    tm = min(TM, n_pad)
    tk = min(TK, n_pad)
    assert n_pad % tm == 0 and n_pad % tk == 0

    kernel = functools.partial(_gcn_layer_kernel, apply_relu=apply_relu)
    return pl.pallas_call(
        kernel,
        out_shape=jax.ShapeDtypeStruct((n_pad, f_out), out_dtype),
        grid=(n_pad // tm, n_pad // tk),
        in_specs=[
            pl.BlockSpec((tm, tk), lambda i, k: (i, k)),       # A_hat tile (streamed)
            pl.BlockSpec((tk, f_in), lambda i, k: (k, 0)),     # X / H k-tile (streamed)
            pl.BlockSpec((f_in, f_out), lambda i, k: (0, 0)),  # W (grid-invariant, tiny)
            pl.BlockSpec((1, f_out), lambda i, k: (0, 0)),     # bias (grid-invariant)
        ],
        out_specs=pl.BlockSpec((tm, f_out), lambda i, k: (i, 0)),
        scratch_shapes=[pltpu.VMEM((tm, f_in), jnp.float32)],
        compiler_params=pltpu.CompilerParams(
            dimension_semantics=("parallel", "arbitrary"),
        ),
    )(a_hat, x, w, b.reshape(1, f_out))


# --------------------------------------------------------------------------
# Glue (plain JAX): normalized adjacency + forward wrapper (padding / dtypes)
# --------------------------------------------------------------------------
def normalized_adjacency(edge_index, num_nodes, dtype=jnp.float32):
    """PyG gcn_norm: D^-1/2 (A + I) D^-1/2, scatter-add edges + remaining self-loops."""
    src, dst = edge_index[0], edge_index[1]
    a = jnp.zeros((num_nodes, num_nodes), dtype)
    a = a.at[dst, src].add(1.0)                        # scatter-add (duplicates sum)
    diag = jnp.diagonal(a)
    a = a + jnp.diag(jnp.where(diag > 0, 0.0, 1.0))    # add_remaining_self_loops
    deg = jnp.sum(a, axis=1)
    d_inv_sqrt = jnp.where(deg > 0, 1.0 / jnp.sqrt(deg), 0.0)
    return d_inv_sqrt[:, None] * a * d_inv_sqrt[None, :]


def gcn_forward(x, a_hat, params):
    """Mirrors GCN.forward (eval mode): returns (conv2_out, hidden_after_relu)."""
    w1, b1, w2, b2 = params
    n, in_dim = x.shape
    hid_dim = w1.shape[1]
    out_dim = w2.shape[1]

    n_pad = _round_up(max(n, TK), TK)      # divisible by both TM and TK (TM | TK)
    in_pad = _round_up(in_dim, LANE)
    hid_pad = _round_up(hid_dim, LANE)
    out_pad = _round_up(out_dim, LANE)

    # Lane-dense padded, bf16 MXU operands (zero padding is exact under matmul).
    a_bf = _pad2d(a_hat, n_pad, n_pad).astype(jnp.bfloat16)
    x_bf = _pad2d(x, n_pad, in_pad).astype(jnp.bfloat16)
    w1_bf = _pad2d(w1, in_pad, hid_pad).astype(jnp.bfloat16)
    w2_bf = _pad2d(w2, hid_pad, out_pad).astype(jnp.bfloat16)
    b1_p = jnp.pad(b1, (0, hid_pad - hid_dim)).astype(jnp.float32)
    b2_p = jnp.pad(b2, (0, out_pad - out_dim)).astype(jnp.float32)

    # conv1: fused (A @ X) @ W1 + b1, ReLU in epilogue; bf16 output feeds conv2's MXU.
    h_pad = gcn_layer(a_bf, x_bf, w1_bf, b1_p, apply_relu=True, out_dtype=jnp.bfloat16)
    # TODO(synk): dropout(p=0.3) skipped (eval mode == identity).

    # conv2: fused (A @ H) @ W2 + b2, f32 output.
    out_padded = gcn_layer(a_bf, h_pad, w2_bf, b2_p, apply_relu=False,
                           out_dtype=jnp.float32)

    out = out_padded[:n, :out_dim]
    h = h_pad[:n, :hid_dim].astype(jnp.float32)
    return out, h


# --------------------------------------------------------------------------
# Main
# --------------------------------------------------------------------------
if __name__ == "__main__":
    key = jax.random.PRNGKey(0)
    k_x, k_w1, k_b1, k_w2, k_b2 = jax.random.split(key, 5)

    num_nodes = 200                       # pads to 512 -> grid (2 row tiles, 1 k tile)
    in_dim, hid_dim, out_dim = 16, 32, 8

    # GCNConv params: weight (F_in, F_out), bias (F_out,)
    w1 = jax.random.normal(k_w1, (in_dim, hid_dim), jnp.float32) * 0.1
    b1 = jax.random.normal(k_b1, (hid_dim,), jnp.float32) * 0.1
    w2 = jax.random.normal(k_w2, (hid_dim, out_dim), jnp.float32) * 0.1
    b2 = jax.random.normal(k_b2, (out_dim,), jnp.float32) * 0.1
    params = (w1, b1, w2, b2)

    x = jax.random.normal(k_x, (num_nodes, in_dim), jnp.float32)

    # Synthetic graph: undirected ring, edge_index shape (2, 2N)
    idx = jnp.arange(num_nodes)
    src = jnp.concatenate([idx, (idx + 1) % num_nodes])
    dst = jnp.concatenate([(idx + 1) % num_nodes, idx])
    edge_index = jnp.stack([src, dst], axis=0)

    a_hat = normalized_adjacency(edge_index, num_nodes)

    out, h = jax.jit(gcn_forward)(x, a_hat, params)
    out = jax.block_until_ready(out)
    h = jax.block_until_ready(h)

    assert out.shape == (num_nodes, out_dim) and h.shape == (num_nodes, hid_dim)

    # Reference 1: mirrors kernel precision ((A@X)@W, bf16 operands, f32 accumulation).
    bf = lambda t: t.astype(jnp.bfloat16)
    f32dot = lambda a, b: jnp.dot(a, b, preferred_element_type=jnp.float32)
    s1 = bf(f32dot(bf(a_hat), bf(x)))
    h_full = jnp.maximum(f32dot(s1, bf(w1)) + b1[None, :], 0.0)
    h_bf = bf(h_full)
    s2 = bf(f32dot(bf(a_hat), h_bf))
    out_r = f32dot(s2, bf(w2)) + b2[None, :]
    assert jnp.allclose(h, h_bf.astype(jnp.float32), atol=5e-3, rtol=5e-3)
    assert jnp.allclose(out, out_r, atol=5e-3, rtol=5e-3)

    # Reference 2: pure f32 math (loose tolerance covers bf16 operand rounding).
    h_f32 = jnp.maximum(a_hat @ (x @ w1) + b1[None, :], 0.0)
    out_f32 = a_hat @ (h_f32 @ w2) + b2[None, :]
    assert jnp.allclose(h, h_f32, atol=5e-2, rtol=5e-2)
    assert jnp.allclose(out, out_f32, atol=5e-2, rtol=5e-2)

    print("KERNEL_OK")
</pallas_src>

<mosaic_0001>
module attributes {stable_mosaic.version = 11 : i64} {
  func.func @_gcn_layer_kernel(%arg0: i32, %arg1: i32, %arg2: memref<256x512xbf16, #tpu.memory_space<vmem>>, %arg3: memref<512x128xbf16, #tpu.memory_space<vmem>>, %arg4: memref<128x128xbf16, #tpu.memory_space<vmem>>, %arg5: memref<1x128xf32, #tpu.memory_space<vmem>>, %arg6: memref<256x128xbf16, #tpu.memory_space<vmem>>, %arg7: memref<256x128xf32, #tpu.memory_space<vmem>>) attributes {dimension_semantics = [#tpu.dimension_semantics<parallel>, #tpu.dimension_semantics<arbitrary>], iteration_bounds = array<i64: 2, 1>, scalar_prefetch = 0 : i64, scratch_operands = 1 : i64, tpu.core_type = #tpu.core_type<tc>, window_params = [{transform_indices = @transform_0, window_bounds = array<i64: 256, 512>}, {transform_indices = @transform_1, window_bounds = array<i64: 512, 128>}, {pipeline_mode = #tpu.pipeline_mode<synchronous>, transform_indices = @transform_2, window_bounds = array<i64: 128, 128>}, {pipeline_mode = #tpu.pipeline_mode<synchronous>, transform_indices = @transform_3, window_bounds = array<i64: 1, 128>}, {transform_indices = @transform_4, window_bounds = array<i64: 256, 128>}]} {
    %c0_i32 = arith.constant 0 : i32
    %0 = arith.cmpi eq, %arg1, %c0_i32 : i32
    %1 = arith.extui %0 : i1 to i32
    %c0_i32_0 = arith.constant 0 : i32
    %2 = arith.cmpi ne, %1, %c0_i32_0 : i32
    scf.if %2 {
      %cst_10 = arith.constant 0.000000e+00 : f32
      %12 = vector.broadcast %cst_10 : f32 to vector<256x128xf32>
      %c0_11 = arith.constant 0 : index
      %c0_12 = arith.constant 0 : index
      %13 = vector.load %arg7[%c0_11, %c0_12] : memref<256x128xf32, #tpu.memory_space<vmem>>, vector<256x128xf32>
      tpu.vector_store %arg7[%c0_11, %c0_12], %12 {strides = array<i32>} : memref<256x128xf32, #tpu.memory_space<vmem>>, vector<256x128xf32>,
    } else {
    }
    %c0 = arith.constant 0 : index
    %c0_1 = arith.constant 0 : index
    %3 = vector.load %arg7[%c0, %c0_1] : memref<256x128xf32, #tpu.memory_space<vmem>>, vector<256x128xf32>
    %c0_2 = arith.constant 0 : index
    %c0_3 = arith.constant 0 : index
    %4 = vector.load %arg2[%c0_2, %c0_3] : memref<256x512xbf16, #tpu.memory_space<vmem>>, vector<256x512xbf16>
    %c0_4 = arith.constant 0 : index
    %c0_5 = arith.constant 0 : index
    %5 = vector.load %arg3[%c0_4, %c0_5] : memref<512x128xbf16, #tpu.memory_space<vmem>>, vector<512x128xbf16>
    %cst = arith.constant dense<0.000000e+00> : vector<256x128xf32>
    %6 = tpu.matmul %4, %5, %cst {dimension_numbers = #tpu.dot_dimension_numbers<[1], [0], [0], [1], [0, 0, 1, 1], [], []>} : vector<256x512xbf16>, vector<512x128xbf16>, vector<256x128xf32> -> vector<256x128xf32>
    %7 = arith.addf %3, %6 : vector<256x128xf32>
    %c0_6 = arith.constant 0 : index
    %c0_7 = arith.constant 0 : index
    %8 = vector.load %arg7[%c0_6, %c0_7] : memref<256x128xf32, #tpu.memory_space<vmem>>, vector<256x128xf32>
    tpu.vector_store %arg7[%c0_6, %c0_7], %7 {strides = array<i32>} : memref<256x128xf32, #tpu.memory_space<vmem>>, vector<256x128xf32>,
    %c0_i32_8 = arith.constant 0 : i32
    %9 = arith.cmpi eq, %arg1, %c0_i32_8 : i32
    %10 = arith.extui %9 : i1 to i32
    %c0_i32_9 = arith.constant 0 : i32
    %11 = arith.cmpi ne, %10, %c0_i32_9 : i32
    scf.if %11 {
      %c0_10 = arith.constant 0 : index
      %c0_11 = arith.constant 0 : index
      %12 = vector.load %arg7[%c0_10, %c0_11] : memref<256x128xf32, #tpu.memory_space<vmem>>, vector<256x128xf32>
      %13 = arith.truncf %12 : vector<256x128xf32> to vector<256x128xbf16>
      %c0_12 = arith.constant 0 : index
      %c0_13 = arith.constant 0 : index
      %14 = vector.load %arg4[%c0_12, %c0_13] : memref<128x128xbf16, #tpu.memory_space<vmem>>, vector<128x128xbf16>
      %cst_14 = arith.constant dense<0.000000e+00> : vector<256x128xf32>
      %15 = tpu.matmul %13, %14, %cst_14 {dimension_numbers = #tpu.dot_dimension_numbers<[1], [0], [0], [1], [0, 0, 1, 1], [], []>} : vector<256x128xbf16>, vector<128x128xbf16>, vector<256x128xf32> -> vector<256x128xf32>
      %c0_15 = arith.constant 0 : index
      %c0_16 = arith.constant 0 : index
      %16 = vector.load %arg5[%c0_15, %c0_16] : memref<1x128xf32, #tpu.memory_space<vmem>>, vector<1x128xf32>
      %17 = vector.broadcast %16 : vector<1x128xf32> to vector<256x128xf32>
      %18 = arith.addf %15, %17 : vector<256x128xf32>
      %cst_17 = arith.constant 0.000000e+00 : f32
      %19 = vector.broadcast %cst_17 : f32 to vector<256x128xf32>
      %20 = arith.maximumf %18, %19 : vector<256x128xf32>
      %21 = arith.truncf %20 : vector<256x128xf32> to vector<256x128xbf16>
      %c0_18 = arith.constant 0 : index
      %c0_19 = arith.constant 0 : index
      %22 = vector.load %arg6[%c0_18, %c0_19] : memref<256x128xbf16, #tpu.memory_space<vmem>>, vector<256x128xbf16>
      tpu.vector_store %arg6[%c0_18, %c0_19], %21 {strides = array<i32>} : memref<256x128xbf16, #tpu.memory_space<vmem>>, vector<256x128xbf16>,
    } else {
    }
    return
  }
  func.func @transform_0(%arg0: i32, %arg1: i32) -> (i32, i32) {
    %c0_i32 = arith.constant 0 : i32
    return %arg0, %arg1 : i32, i32
  }
  func.func @transform_1(%arg0: i32, %arg1: i32) -> (i32, i32) {
    %c0_i32 = arith.constant 0 : i32
    %c0_i32_0 = arith.constant 0 : i32
    return %arg1, %c0_i32 : i32, i32
  }
  func.func @transform_2(%arg0: i32, %arg1: i32) -> (i32, i32) {
    %c0_i32 = arith.constant 0 : i32
    %c0_i32_0 = arith.constant 0 : i32
    %c0_i32_1 = arith.constant 0 : i32
    return %c0_i32, %c0_i32_0 : i32, i32
  }
  func.func @transform_3(%arg0: i32, %arg1: i32) -> (i32, i32) {
    %c0_i32 = arith.constant 0 : i32
    %c0_i32_0 = arith.constant 0 : i32
    %c0_i32_1 = arith.constant 0 : i32
    return %c0_i32, %c0_i32_0 : i32, i32
  }
  func.func @transform_4(%arg0: i32, %arg1: i32) -> (i32, i32) {
    %c0_i32 = arith.constant 0 : i32
    %c0_i32_0 = arith.constant 0 : i32
    return %arg0, %c0_i32 : i32, i32
  }
}

module attributes {stable_mosaic.version = 11 : i64} {
  func.func @_gcn_layer_kernel(%arg0: i32, %arg1: i32, %arg2: memref<256x512xbf16, #tpu.memory_space<vmem>>, %arg3: memref<512x128xbf16, #tpu.memory_space<vmem>>, %arg4: memref<128x128xbf16, #tpu.memory_space<vmem>>, %arg5: memref<1x128xf32, #tpu.memory_space<vmem>>, %arg6: memref<256x128xf32, #tpu.memory_space<vmem>>, %arg7: memref<256x128xf32, #tpu.memory_space<vmem>>) attributes {dimension_semantics = [#tpu.dimension_semantics<parallel>, #tpu.dimension_semantics<arbitrary>], iteration_bounds = array<i64: 2, 1>, scalar_prefetch = 0 : i64, scratch_operands = 1 : i64, tpu.core_type = #tpu.core_type<tc>, window_params = [{transform_indices = @transform_0, window_bounds = array<i64: 256, 512>}, {transform_indices = @transform_1, window_bounds = array<i64: 512, 128>}, {pipeline_mode = #tpu.pipeline_mode<synchronous>, transform_indices = @transform_2, window_bounds = array<i64: 128, 128>}, {pipeline_mode = #tpu.pipeline_mode<synchronous>, transform_indices = @transform_3, window_bounds = array<i64: 1, 128>}, {transform_indices = @transform_4, window_bounds = array<i64: 256, 128>}]} {
    %c0_i32 = arith.constant 0 : i32
    %0 = arith.cmpi eq, %arg1, %c0_i32 : i32
    %1 = arith.extui %0 : i1 to i32
    %c0_i32_0 = arith.constant 0 : i32
    %2 = arith.cmpi ne, %1, %c0_i32_0 : i32
    scf.if %2 {
      %cst_10 = arith.constant 0.000000e+00 : f32
      %12 = vector.broadcast %cst_10 : f32 to vector<256x128xf32>
      %c0_11 = arith.constant 0 : index
      %c0_12 = arith.constant 0 : index
      %13 = vector.load %arg7[%c0_11, %c0_12] : memref<256x128xf32, #tpu.memory_space<vmem>>, vector<256x128xf32>
      tpu.vector_store %arg7[%c0_11, %c0_12], %12 {strides = array<i32>} : memref<256x128xf32, #tpu.memory_space<vmem>>, vector<256x128xf32>,
    } else {
    }
    %c0 = arith.constant 0 : index
    %c0_1 = arith.constant 0 : index
    %3 = vector.load %arg7[%c0, %c0_1] : memref<256x128xf32, #tpu.memory_space<vmem>>, vector<256x128xf32>
    %c0_2 = arith.constant 0 : index
    %c0_3 = arith.constant 0 : index
    %4 = vector.load %arg2[%c0_2, %c0_3] : memref<256x512xbf16, #tpu.memory_space<vmem>>, vector<256x512xbf16>
    %c0_4 = arith.constant 0 : index
    %c0_5 = arith.constant 0 : index
    %5 = vector.load %arg3[%c0_4, %c0_5] : memref<512x128xbf16, #tpu.memory_space<vmem>>, vector<512x128xbf16>
    %cst = arith.constant dense<0.000000e+00> : vector<256x128xf32>
    %6 = tpu.matmul %4, %5, %cst {dimension_numbers = #tpu.dot_dimension_numbers<[1], [0], [0], [1], [0, 0, 1, 1], [], []>} : vector<256x512xbf16>, vector<512x128xbf16>, vector<256x128xf32> -> vector<256x128xf32>
    %7 = arith.addf %3, %6 : vector<256x128xf32>
    %c0_6 = arith.constant 0 : index
    %c0_7 = arith.constant 0 : index
    %8 = vector.load %arg7[%c0_6, %c0_7] : memref<256x128xf32, #tpu.memory_space<vmem>>, vector<256x128xf32>
    tpu.vector_store %arg7[%c0_6, %c0_7], %7 {strides = array<i32>} : memref<256x128xf32, #tpu.memory_space<vmem>>, vector<256x128xf32>,
    %c0_i32_8 = arith.constant 0 : i32
    %9 = arith.cmpi eq, %arg1, %c0_i32_8 : i32
    %10 = arith.extui %9 : i1 to i32
    %c0_i32_9 = arith.constant 0 : i32
    %11 = arith.cmpi ne, %10, %c0_i32_9 : i32
    scf.if %11 {
      %c0_10 = arith.constant 0 : index
      %c0_11 = arith.constant 0 : index
      %12 = vector.load %arg7[%c0_10, %c0_11] : memref<256x128xf32, #tpu.memory_space<vmem>>, vector<256x128xf32>
      %13 = arith.truncf %12 : vector<256x128xf32> to vector<256x128xbf16>
      %c0_12 = arith.constant 0 : index
      %c0_13 = arith.constant 0 : index
      %14 = vector.load %arg4[%c0_12, %c0_13] : memref<128x128xbf16, #tpu.memory_space<vmem>>, vector<128x128xbf16>
      %cst_14 = arith.constant dense<0.000000e+00> : vector<256x128xf32>
      %15 = tpu.matmul %13, %14, %cst_14 {dimension_numbers = #tpu.dot_dimension_numbers<[1], [0], [0], [1], [0, 0, 1, 1], [], []>} : vector<256x128xbf16>, vector<128x128xbf16>, vector<256x128xf32> -> vector<256x128xf32>
      %c0_15 = arith.constant 0 : index
      %c0_16 = arith.constant 0 : index
      %16 = vector.load %arg5[%c0_15, %c0_16] : memref<1x128xf32, #tpu.memory_space<vmem>>, vector<1x128xf32>
      %17 = vector.broadcast %16 : vector<1x128xf32> to vector<256x128xf32>
      %18 = arith.addf %15, %17 : vector<256x128xf32>
      %c0_17 = arith.constant 0 : index
      %c0_18 = arith.constant 0 : index
      %19 = vector.load %arg6[%c0_17, %c0_18] : memref<256x128xf32, #tpu.memory_space<vmem>>, vector<256x128xf32>
      tpu.vector_store %arg6[%c0_17, %c0_18], %18 {strides = array<i32>} : memref<256x128xf32, #tpu.memory_space<vmem>>, vector<256x128xf32>,
    } else {
    }
    return
  }
  func.func @transform_0(%arg0: i32, %arg1: i32) -> (i32, i32) {
    %c0_i32 = arith.constant 0 : i32
    return %arg0, %arg1 : i32, i32
  }
  func.func @transform_1(%arg0: i32, %arg1: i32) -> (i32, i32) {
    %c0_i32 = arith.constant 0 : i32
    %c0_i32_0 = arith.constant 0 : i32
    return %arg1, %c0_i32 : i32, i32
  }
  func.func @transform_2(%arg0: i32, %arg1: i32) -> (i32, i32) {
    %c0_i32 = arith.constant 0 : i32
    %c0_i32_0 = arith.constant 0 : i32
    %c0_i32_1 = arith.constant 0 : i32
    return %c0_i32, %c0_i32_0 : i32, i32
  }
  func.func @transform_3(%arg0: i32, %arg1: i32) -> (i32, i32) {
    %c0_i32 = arith.constant 0 : i32
    %c0_i32_0 = arith.constant 0 : i32
    %c0_i32_1 = arith.constant 0 : i32
    return %c0_i32, %c0_i32_0 : i32, i32
  }
  func.func @transform_4(%arg0: i32, %arg1: i32) -> (i32, i32) {
    %c0_i32 = arith.constant 0 : i32
    %c0_i32_0 = arith.constant 0 : i32
    return %arg0, %c0_i32 : i32, i32
  }
}

</mosaic_0001>

<bundles_post_ra>
// kernel: gcn_forward.3
= control target key start
LH: loop header
LB: loop body
LE: loop exit
PB: predicated region body
PF: predicated region fallthrough
CT: control target
= control target key end

     0   :  { %s2390_s15 = smov 0   ;;  %s2392_s16 = smov 0   ;;  %s2708_s0 = inlined_call_operand.vmem [shape: bf16[512,512], index: 0, kind: input, shape index: {}]   ;;  %s2709_s1 = inlined_call_operand.vmem [shape: bf16[512,128], index: 1, kind: input, shape index: {}]   ;;  %s2710_s2 = inlined_call_operand.vmem [shape: bf16[128,128], index: 2, kind: input, shape index: {}]   ;;  %s2711_s3 = inlined_call_operand.vmem [shape: f32[1,128], index: 3, kind: input, shape index: {}]   ;;  %s2712_s4 = inlined_call_operand.vmem [shape: f32[512,128], index: 4, kind: output, shape index: {}]  }
   0x1   :  { %s2394_s17 = smov 0  }
   0x2 LB: > { %s26_s18 = sadd.s32 1, %s2359_s16  ;;  %p1755_p0 = scmp.ge.s32.totalorder %s2363_s17, 1  ;;  %s2363_s17 = sphi %s2394_s17, %s14_s17   ;;  %s2359_s16 = sphi %s2392_s16, %s2714_s16   ;;  %s2355_s15 = sphi %s2390_s15, %s2713_s15  }
   0x3   : > { %p28_p1 = scmp.ge.s32.totalorder %s26_s18, 2  ;;  %p194_p2 = scmp.lt.s32.totalorder %s2363_s17, 3 }
   0x5   : > { %s2716_s18 = smov (%p28_p1, %s26_s18), 0  ;;  %p195_p3 = pnand %p1755_p0, %p194_p2 }
   0x6   : > { %v2205_v0 = vld [vmem:[%s2709_s1 + $0x40] sm:$0xff] (!%p195_p3)   ;;  %s1756_s21 = sshll.u32 (!%p195_p3), %s2355_s15, 5  ;;  %v2207_v2 = vld [vmem:[%s2709_s1 + $0x48] sm:$0xff] (!%p195_p3)   ;;  %v2209_v4 = vld [vmem:[%s2709_s1 + $0x50] sm:$0xff] (!%p195_p3)  }
   0x7   : > { %198 = sbr.rel (%p195_p3) target bundleno = 630 (0x276), region = 36  ;;  %v2206_v1 = vld [vmem:[%s2709_s1] sm:$0xff] (!%p195_p3)   ;;  %2165 = vmatprep.subr.bf16.mxu1 (!%p195_p3), %v2205_v0  ;;  %1869 = vmatprep.subr.bf16.mxu0 (!%p195_p3), %v2205_v0  ;;  %v2208_v3 = vld [vmem:[%s2709_s1 + $0x8] sm:$0xff] (!%p195_p3)   ;;  %p232_p4 = scmp.lt.s32.totalorder (!%p195_p3), %s1756_s21, 63  ;;  %v2210_v5 = vld [vmem:[%s2709_s1 + $0x10] sm:$0xff] (!%p195_p3)  }
   0x8   : > { %2173 = vmatpush3.bf16.msra.mxu1 (!%p195_p3), %v2206_v1  ;;  %1870 = vmatpush3.bf16.msra.mxu0 (!%p195_p3), %v2206_v1  ;;  %v2211_v6 = vld [vmem:[%s2709_s1 + $0x58] sm:$0xff] (!%p195_p3)   ;;  %v2213_v8 = vld [vmem:[%s2709_s1 + $0x60] sm:$0xff] (!%p195_p3)   ;;  %v2215_v10 = vld [vmem:[%s2709_s1 + $0x68] sm:$0xff] (!%p195_p3)  }
   0x9   : > { %2166 = vmatprep.subr.bf16.mxu1 (!%p195_p3), %v2207_v2  ;;  %1871 = vmatprep.subr.bf16.mxu0 (!%p195_p3), %v2207_v2  ;;  %v2212_v7 = vld [vmem:[%s2709_s1 + $0x18] sm:$0xff] (!%p195_p3)   ;;  %v2214_v9 = vld [vmem:[%s2709_s1 + $0x20] sm:$0xff] (!%p195_p3)   ;;  %v2216_v12 = vld [vmem:[%s2709_s1 + $0x28] sm:$0xff] (!%p195_p3)  }
   0xa   : > { %v2217_v13 = vld [vmem:[%s2709_s1 + $0x70] sm:$0xff] (!%p195_p3)   ;;  %v2219_v15 = vld [vmem:[%s2709_s1 + $0x78] sm:$0xff] (!%p195_p3)   ;;  %v2224_v17 = vld [vmem:[%s2709_s1 + $0xc0] sm:$0xff] (!%p195_p3)  }
   0xb   : > { %v2218_v14 = vld [vmem:[%s2709_s1 + $0x30] sm:$0xff] (!%p195_p3)   ;;  %v2220_v16 = vld [vmem:[%s2709_s1 + $0x38] sm:$0xff] (!%p195_p3)   ;;  %v2225_v19 = vld [vmem:[%s2709_s1 + $0x80] sm:$0xff] (!%p195_p3)  }
   0xc   : > { %2174 = vmatpush3.bf16.msra.mxu1 (!%p195_p3), %v2208_v3  ;;  %1872 = vmatpush3.bf16.msra.mxu0 (!%p195_p3), %v2208_v3  ;;  %v2226_v21 = vld [vmem:[%s2709_s1 + $0xc8] sm:$0xff] (!%p195_p3)   ;;  %v2231_v24 = vld [vmem:[%s2709_s1 + $0xd0] sm:$0xff] (!%p195_p3)   ;;  %v2233_v28 = vld [vmem:[%s2709_s1 + $0xd8] sm:$0xff] (!%p195_p3)  }
   0xd   : > { %2167 = vmatprep.subr.bf16.mxu1 (!%p195_p3), %v2209_v4  ;;  %1873 = vmatprep.subr.bf16.mxu0 (!%p195_p3), %v2209_v4  ;;  %v2227_v22 = vld [vmem:[%s2709_s1 + $0x88] sm:$0xff] (!%p195_p3)   ;;  %v2232_v25 = vld [vmem:[%s2709_s1 + $0x90] sm:$0xff] (!%p195_p3)   ;;  %v2234_v31 = vld [vmem:[%s2709_s1 + $0x98] sm:$0xff] (!%p195_p3)  }
   0xe   : > { %s2718_s21 = smov (!%p232_p4, %s1756_s21), 63  ;;  %v2238_v33 = vld [vmem:[%s2709_s1 + $0xe0] sm:$0xff]   ;;  %v2240_v38 = vld [vmem:[%s2709_s1 + $0xe8] sm:$0xff]   ;;  %v2245_v41 = vld [vmem:[%s2709_s1 + $0xf0] sm:$0xff]  }
   0xf   : > { %s1868_s10 = sshll.u32 %s2718_s21, 4  ;;  %v2239_v36 = vld [vmem:[%s2709_s1 + $0xa0] sm:$0xff]   ;;  %v2241_v39 = vld [vmem:[%s2709_s1 + $0xa8] sm:$0xff]   ;;  %v2246_v44 = vld [vmem:[%s2709_s1 + $0xb0] sm:$0xff]  }
  0x10   : > { %2175 = vmatpush3.bf16.msra.mxu1 %v2210_v5  ;;  %1874 = vmatpush3.bf16.msra.mxu0 %v2210_v5  ;;  %s2441_s15 = scalar_lea.vmem %s2708_s0, %s1868_s10  ;;  %v2247_v46 = vld [vmem:[%s2709_s1 + $0xf8] sm:$0xff]  }
  0x11   : > { %2168 = vmatprep.subr.bf16.mxu1 %v2211_v6  ;;  %1875 = vmatprep.subr.bf16.mxu0 %v2211_v6  ;;  %v2223_v11 = vld [vmem:[%s2441_s15 + $0x184] ss:$16 sps:$4 sm:$0xff]   ;;  %v2221_v18 = vld [vmem:[%s2441_s15 + $0x180] ss:$16 sps:$4 sm:$0xff]   ;;  %v2254_v45 = vld [vmem:[%s2441_s15 + $0xc] ss:$16 sps:$4 sm:$0xff]  }
  0x12   : > { %1091 = vmatprep.mubr.bf16.mxu1 %v2223_v11  ;;  %v2228_v20 = vld [vmem:[%s2441_s15 + $0x1a4] ss:$16 sps:$4 sm:$0xff]   ;;  %v2230_v23 = vld [vmem:[%s2441_s15 + $0x1a0] ss:$16 sps:$4 sm:$0xff]   ;;  %v2248_v47 = vld [vmem:[%s2709_s1 + $0xb8] sm:$0xff]  }
  0x13   : > { %v2249_v26 = vld [vmem:[%s2441_s15] ss:$16 sps:$4 sm:$0xff]   ;;  %v2251_v27 = vld [vmem:[%s2441_s15 + $0x4] ss:$16 sps:$4 sm:$0xff]   ;;  %v2252_v48 = vld [vmem:[%s2441_s15 + $0x8] ss:$16 sps:$4 sm:$0xff]  }
  0x14   : > { %2176 = vmatpush3.bf16.msra.mxu1 %v2212_v7  ;;  %1876 = vmatpush3.bf16.msra.mxu0 %v2212_v7  ;;  %v2235_v29 = vld [vmem:[%s2441_s15 + $0x1c4] ss:$16 sps:$4 sm:$0xff]   ;;  %v2237_v32 = vld [vmem:[%s2441_s15 + $0x1c0] ss:$16 sps:$4 sm:$0xff]   ;;  %v2257_v51 = vld [vmem:[%s2441_s15 + $0x2c] ss:$16 sps:$4 sm:$0xff]  }
  0x15   : > { %2169 = vmatprep.subr.bf16.mxu1 %v2213_v8  ;;  %1877 = vmatprep.subr.bf16.mxu0 %v2213_v8  ;;  %v2255_v30 = vld [vmem:[%s2441_s15 + $0x24] ss:$16 sps:$4 sm:$0xff]   ;;  %v2259_v34 = vld [vmem:[%s2441_s15 + $0x20] ss:$16 sps:$4 sm:$0xff]   ;;  %v2260_v53 = vld [vmem:[%s2441_s15 + $0x28] ss:$16 sps:$4 sm:$0xff]  }
  0x16   : > { %995 = vmatprep.mubr.bf16.mxu0 %v2251_v27  ;;  %v2261_v35 = vld [vmem:[%s2441_s15 + $0x44] ss:$16 sps:$4 sm:$0xff]   ;;  %v2244_v40 = vld [vmem:[%s2441_s15 + $0x1e0] ss:$16 sps:$4 sm:$0xff]   ;;  %v2263_v55 = vld [vmem:[%s2441_s15 + $0x4c] ss:$16 sps:$4 sm:$0xff]  }
  0x17   : > { %v2242_v37 = vld [vmem:[%s2441_s15 + $0x1e4] ss:$16 sps:$4 sm:$0xff]   ;;  %v2265_v42 = vld [vmem:[%s2441_s15 + $0x40] ss:$16 sps:$4 sm:$0xff]   ;;  %v2266_v57 = vld [vmem:[%s2441_s15 + $0x48] ss:$16 sps:$4 sm:$0xff]  }
  0x18   : > { %2177 = vmatpush3.bf16.msra.mxu1 %v2214_v9  ;;  %1878 = vmatpush3.bf16.msra.mxu0 %v2214_v9  ;;  %v2267_v43 = vld [vmem:[%s2441_s15 + $0x64] ss:$16 sps:$4 sm:$0xff]   ;;  %v2271_v49 = vld [vmem:[%s2441_s15 + $0x60] ss:$16 sps:$4 sm:$0xff]   ;;  %v2269_v59 = vld [vmem:[%s2441_s15 + $0x6c] ss:$16 sps:$4 sm:$0xff]  }
  0x19   : > { %2170 = vmatprep.subr.bf16.mxu1 %v2215_v10  ;;  %1879 = vmatprep.subr.bf16.mxu0 %v2215_v10  ;;  %v2273_v50 = vld [vmem:[%s2441_s15 + $0x84] ss:$16 sps:$4 sm:$0xff]   ;;  %v2277_v52 = vld [vmem:[%s2441_s15 + $0x80] ss:$16 sps:$4 sm:$0xff]   ;;  %v2272_v61 = vld [vmem:[%s2441_s15 + $0x68] ss:$16 sps:$4 sm:$0xff]  }
  0x1a   : > { %v2279_v54 = vld [vmem:[%s2441_s15 + $0xa4] ss:$16 sps:$4 sm:$0xff]   ;;  %v2283_v56 = vld [vmem:[%s2441_s15 + $0xa0] ss:$16 sps:$4 sm:$0xff]   ;;  %v2275_v63 = vld [vmem:[%s2441_s15 + $0x8c] ss:$16 sps:$4 sm:$0xff]  }
  0x1b   : > { %v2285_v58 = vld [vmem:[%s2441_s15 + $0xc4] ss:$16 sps:$4 sm:$0xff]   ;;  %v2289_v60 = vld [vmem:[%s2441_s15 + $0xc0] ss:$16 sps:$4 sm:$0xff]   ;;  %v2278_v1 = vld [vmem:[%s2441_s15 + $0x88] ss:$16 sps:$4 sm:$0xff]  }
  0x1c   : > { %2178 = vmatpush3.bf16.msra.mxu1 %v2216_v12  ;;  %1880 = vmatpush3.bf16.msra.mxu0 %v2216_v12  ;;  %v2291_v62 = vld [vmem:[%s2441_s15 + $0xe4] ss:$16 sps:$4 sm:$0xff]   ;;  %v2295_v0 = vld [vmem:[%s2441_s15 + $0xe0] ss:$16 sps:$4 sm:$0xff]   ;;  %v2281_v3 = vld [vmem:[%s2441_s15 + $0xac] ss:$16 sps:$4 sm:$0xff]  }
  0x1d   : > { %2171 = vmatprep.subr.bf16.mxu1 %v2217_v13  ;;  %1881 = vmatprep.subr.bf16.mxu0 %v2217_v13  ;;  %v2297_v2 = vld [vmem:[%s2441_s15 + $0x104] ss:$16 sps:$4 sm:$0xff]   ;;  %v2301_v4 = vld [vmem:[%s2441_s15 + $0x100] ss:$16 sps:$4 sm:$0xff]   ;;  %v2284_v5 = vld [vmem:[%s2441_s15 + $0xa8] ss:$16 sps:$4 sm:$0xff]  }
  0x1e   : > { %v2303_v6 = vld [vmem:[%s2441_s15 + $0x124] ss:$16 sps:$4 sm:$0xff]   ;;  %v2287_v7 = vld [vmem:[%s2441_s15 + $0xcc] ss:$16 sps:$4 sm:$0xff]   ;;  %v2307_v8 = vld [vmem:[%s2441_s15 + $0x120] ss:$16 sps:$4 sm:$0xff]  }
  0x1f   : > { %v2290_v9 = vld [vmem:[%s2441_s15 + $0xc8] ss:$16 sps:$4 sm:$0xff]   ;;  %v2309_v10 = vld [vmem:[%s2441_s15 + $0x144] ss:$16 sps:$4 sm:$0xff]   ;;  %v2293_v11 = vld [vmem:[%s2441_s15 + $0xec] ss:$16 sps:$4 sm:$0xff]  }
  0x20   : > { %2179 = vmatpush3.bf16.msra.mxu1 %v2218_v14  ;;  %1882 = vmatpush3.bf16.msra.mxu0 %v2218_v14  ;;  %v2313_v12 = vld [vmem:[%s2441_s15 + $0x140] ss:$16 sps:$4 sm:$0xff]   ;;  %v2296_v13 = vld [vmem:[%s2441_s15 + $0xe8] ss:$16 sps:$4 sm:$0xff]   ;;  %v2315_v14 = vld [vmem:[%s2441_s15 + $0x164] ss:$16 sps:$4 sm:$0xff]  }
  0x21   : > { %2172 = vmatprep.subr.bf16.mxu1 %v2219_v15  ;;  %1883 = vmatprep.subr.bf16.mxu0 %v2219_v15  ;;  %v2299_v15 = vld [vmem:[%s2441_s15 + $0x10c] ss:$16 sps:$4 sm:$0xff]   ;;  %v2337_v27 = vld [vmem:[%s2710_s2 + $0x20] sm:$0xff]  }
  0x24   : > { %2180 = vmatpush3.bf16.msra.mxu1 %v2220_v16  ;;  %1884 = vmatpush3.bf16.msra.mxu0 %v2220_v16  ;;  %v2319_v16 = vld [vmem:[%s2441_s15 + $0x160] ss:$16 sps:$4 sm:$0xff]  }
  0x25   : > { %1981 = vmatprep.subr.bf16.mxu1 %v2224_v17  ;;  %v2302_v17 = vld [vmem:[%s2441_s15 + $0x108] ss:$16 sps:$4 sm:$0xff]  }
  0x27   : > { %1092 = vmatmul.mubr.bf16.vlgmr.msra.gmra.mrb[0].mxu1 %v2221_v18  ;;  %996 = vmatmul.mubr.bf16.vlgmr.msra.gmra.mrb[0].mxu0 %v2249_v26  ;;  %v2305_v18 = vld [vmem:[%s2441_s15 + $0x12c] ss:$16 sps:$4 sm:$0xff]  }
  0x28   : > { %1982 = vmatpush3.bf16.msra.mxu1 %v2225_v19  ;;  %1099 = vmatprep.mubr.bf16.mxu1 %v2228_v20  ;;  %v2333_v19 = vld [vmem:[%s2710_s2] sm:$0xff]   ;;  %v2308_v20 = vld [vmem:[%s2441_s15 + $0x128] ss:$16 sps:$4 sm:$0xff]  }
  0x29   : > { %1983 = vmatprep.subr.bf16.mxu1 %v2226_v21  ;;  %1003 = vmatprep.mubr.bf16.mxu0 %v2255_v30  ;;  %v2311_v21 = vld [vmem:[%s2441_s15 + $0x14c] ss:$16 sps:$4 sm:$0xff]  }
  0x2a   : > { %2117 = vmatprep.subr.bf16.mxu0 %v2333_v19  ;;  %v2336_v26 = vld [vmem:[%s2710_s2 + $0x18] sm:$0xff]   ;;  %v2338_v30 = vld [vmem:[%s2710_s2 + $0x28] sm:$0xff]  }
  0x2b   : > { %2118 = vmatpush3.bf16.msra.mxu0 %v2333_v19 }
  0x2c   : > { %1984 = vmatpush3.bf16.msra.mxu1 %v2227_v22  ;;  %v2334_v22 = vld [vmem:[%s2710_s2 + $0x8] sm:$0xff]  }
  0x2d   : > { %1985 = vmatprep.subr.bf16.mxu1 %v2231_v24  ;;  %2119 = vmatprep.subr.bf16.mxu0 %v2334_v22  ;;  %v2314_v24 = vld [vmem:[%s2441_s15 + $0x148] ss:$16 sps:$4 sm:$0xff]  }
  0x2f   : > { %1100 = vmatmul.mubr.bf16.gmra.mrb[4].mxu1 %v2230_v23  ;;  %1004 = vmatmul.mubr.bf16.gmra.mrb[4].mxu0 %v2259_v34  ;;  %v2335_v23 = vld [vmem:[%s2710_s2 + $0x10] sm:$0xff]   ;;  %v2340_v34 = vld [vmem:[%s2710_s2 + $0x38] sm:$0xff]  }
  0x30   : > { %1986 = vmatpush3.bf16.msra.mxu1 %v2232_v25  ;;  %1107 = vmatprep.mubr.bf16.mxu1 %v2235_v29  ;;  %v2317_v25 = vld [vmem:[%s2441_s15 + $0x16c] ss:$16 sps:$4 sm:$0xff]  }
  0x31   : > { %1987 = vmatprep.subr.bf16.mxu1 %v2233_v28  ;;  %1011 = vmatprep.mubr.bf16.mxu0 %v2261_v35  ;;  %v2320_v28 = vld [vmem:[%s2441_s15 + $0x168] ss:$16 sps:$4 sm:$0xff]   ;;  %v2321_v29 = vld [vmem:[%s2441_s15 + $0x18c] ss:$16 sps:$4 sm:$0xff]  }
  0x32   : > { %2120 = vmatpush3.bf16.msra.mxu0 %v2334_v22  ;;  %v2326_v35 = vld [vmem:[%s2441_s15 + $0x1a8] ss:$16 sps:$4 sm:$0xff]  }
  0x33   : > { %2121 = vmatprep.subr.bf16.mxu0 %v2335_v23 }
  0x34   : > { %1988 = vmatpush3.bf16.msra.mxu1 %v2234_v31  ;;  %v2339_v31 = vld [vmem:[%s2710_s2 + $0x30] sm:$0xff]  }
  0x35   : > { %1989 = vmatprep.subr.bf16.mxu1 %v2238_v33  ;;  %v2324_v33 = vld [vmem:[%s2441_s15 + $0x1ac] ss:$16 sps:$4 sm:$0xff]  }
  0x36   : > { %2122 = vmatpush3.bf16.msra.mxu0 %v2335_v23 }
  0x37   : > { %1108 = vmatmul.mubr.bf16.gmra.mrb[8].mxu1 %v2237_v32  ;;  %1012 = vmatmul.mubr.bf16.gmra.mrb[8].mxu0 %v2265_v42  ;;  %v2323_v32 = vld [vmem:[%s2441_s15 + $0x188] ss:$16 sps:$4 sm:$0xff]  }
  0x38   : > { %1990 = vmatpush3.bf16.msra.mxu1 %v2239_v36  ;;  %1115 = vmatprep.mubr.bf16.mxu1 %v2242_v37  ;;  %v2327_v36 = vld [vmem:[%s2441_s15 + $0x1cc] ss:$16 sps:$4 sm:$0xff]   ;;  %v2329_v37 = vld [vmem:[%s2441_s15 + $0x1c8] ss:$16 sps:$4 sm:$0xff]  }
  0x39   : > { %1991 = vmatprep.subr.bf16.mxu1 %v2240_v38  ;;  %1019 = vmatprep.mubr.bf16.mxu0 %v2267_v43  ;;  %v2330_v38 = vld [vmem:[%s2441_s15 + $0x1ec] ss:$16 sps:$4 sm:$0xff]  }
  0x3a   : > { %2123 = vmatprep.subr.bf16.mxu0 %v2336_v26 }
  0x3b   : > { %2124 = vmatpush3.bf16.msra.mxu0 %v2336_v26 }
  0x3c   : > { %1992 = vmatpush3.bf16.msra.mxu1 %v2241_v39  ;;  %2125 = vmatprep.subr.bf16.mxu0 %v2337_v27  ;;  %v2332_v39 = vld [vmem:[%s2441_s15 + $0x1e8] ss:$16 sps:$4 sm:$0xff]   ;;  %s1760_s15 = sshll.u32 %s2718_s21, 3 }
  0x3d   : > { %1993 = vmatprep.subr.bf16.mxu1 %v2245_v41  ;;  %s2633_s23 = scalar_lea.vmem %s2712_s4, %s1760_s15 }
  0x3f   : > { %1116 = vmatmul.mubr.bf16.gmra.mrb[12].mxu1 %v2244_v40  ;;  %1020 = vmatmul.mubr.bf16.gmra.mrb[12].mxu0 %v2271_v49 }
  0x40   : > { %1994 = vmatpush3.bf16.msra.mxu1 %v2246_v44  ;;  %1156 = vmatprep.mubr.bf16.mxu1 %v2254_v45 }
  0x41   : > { %1995 = vmatprep.subr.bf16.mxu1 %v2247_v46  ;;  %1027 = vmatprep.mubr.bf16.mxu0 %v2273_v50 }
  0x42   : > { %2126 = vmatpush3.bf16.msra.mxu0 %v2337_v27 }
  0x43   : > { %2127 = vmatprep.subr.bf16.mxu0 %v2338_v30 }
  0x44   : > { %1996 = vmatpush3.bf16.msra.mxu1 %v2248_v47 }
  0x46   : > { %2128 = vmatpush3.bf16.msra.mxu0 %v2338_v30 }
  0x47   : > { %1157 = vmatmul.mubr.bf16.vlgmr.msra.gmra.mrb[16].mxu1 %v2252_v48  ;;  %1028 = vmatmul.mubr.bf16.gmra.mrb[16].mxu0 %v2277_v52 }
  0x48   : > { %1164 = vmatprep.mubr.bf16.mxu1 %v2257_v51  ;;  %1035 = vmatprep.mubr.bf16.mxu0 %v2279_v54 }
  0x49   : > { %2129 = vmatprep.subr.bf16.mxu0 %v2339_v31 }
  0x4a   : > { %2130 = vmatpush3.bf16.msra.mxu0 %v2339_v31 }
  0x4b   : > { %2131 = vmatprep.subr.bf16.mxu0 %v2340_v34 }
  0x4e   : > { %2132 = vmatpush3.bf16.msra.mxu0 %v2340_v34 }
  0x4f   : > { %1165 = vmatmul.mubr.bf16.gmra.mrb[20].mxu1 %v2260_v53  ;;  %1036 = vmatmul.mubr.bf16.gmra.mrb[20].mxu0 %v2283_v56 }
  0x50   : > { %1172 = vmatprep.mubr.bf16.mxu1 %v2263_v55  ;;  %1043 = vmatprep.mubr.bf16.mxu0 %v2285_v58 }
  0x57   : > { %1173 = vmatmul.mubr.bf16.gmra.mrb[24].mxu1 %v2266_v57  ;;  %1044 = vmatmul.mubr.bf16.gmra.mrb[24].mxu0 %v2289_v60 }
  0x58   : > { %1180 = vmatprep.mubr.bf16.mxu1 %v2269_v59  ;;  %1051 = vmatprep.mubr.bf16.mxu0 %v2291_v62 }
  0x5f   : > { %1181 = vmatmul.mubr.bf16.gmra.mrb[28].mxu1 %v2272_v61  ;;  %1052 = vmatmul.mubr.bf16.gmra.mrb[28].mxu0 %v2295_v0 }
  0x60   : > { %1188 = vmatprep.mubr.bf16.mxu1 %v2275_v63  ;;  %1059 = vmatprep.mubr.bf16.mxu0 %v2297_v2 }
  0x67   : > { %1189 = vmatmul.mubr.bf16.gmra.mrb[32].mxu1 %v2278_v1  ;;  %1060 = vmatmul.mubr.bf16.gmra.mrb[32].mxu0 %v2301_v4 }
  0x68   : > { %1196 = vmatprep.mubr.bf16.mxu1 %v2281_v3  ;;  %1067 = vmatprep.mubr.bf16.mxu0 %v2303_v6 }
  0x6f   : > { %1197 = vmatmul.mubr.bf16.gmra.mrb[36].mxu1 %v2284_v5  ;;  %1068 = vmatmul.mubr.bf16.gmra.mrb[36].mxu0 %v2307_v8 }
  0x70   : > { %1204 = vmatprep.mubr.bf16.mxu1 %v2287_v7  ;;  %1075 = vmatprep.mubr.bf16.mxu0 %v2309_v10 }
  0x77   : > { %1205 = vmatmul.mubr.bf16.gmra.mrb[40].mxu1 %v2290_v9  ;;  %1076 = vmatmul.mubr.bf16.gmra.mrb[40].mxu0 %v2313_v12 }
  0x78   : > { %1212 = vmatprep.mubr.bf16.mxu1 %v2293_v11  ;;  %1083 = vmatprep.mubr.bf16.mxu0 %v2315_v14 }
  0x7f   : > { %1213 = vmatmul.mubr.bf16.gmra.mrb[44].mxu1 %v2296_v13  ;;  %1084 = vmatmul.mubr.bf16.gmra.mrb[44].mxu0 %v2319_v16 }
  0x80   : > { %1220 = vmatprep.mubr.bf16.mxu1 %v2299_v15 }
  0x87   : > { %1221 = vmatmul.mubr.bf16.gmra.mrb[48].mxu1 %v2302_v17 }
  0x88   : > { %1228 = vmatprep.mubr.bf16.mxu1 %v2305_v18 }
  0x8f   : > { %1229 = vmatmul.mubr.bf16.gmra.mrb[52].mxu1 %v2308_v20 }
  0x90   : > { %1236 = vmatprep.mubr.bf16.mxu1 %v2311_v21 }
  0x97   : > { %1237 = vmatmul.mubr.bf16.gmra.mrb[56].mxu1 %v2314_v24 }
  0x98   : > { %1244 = vmatprep.mubr.bf16.mxu1 %v2317_v25 }
  0x9f   : > { %1245 = vmatmul.mubr.bf16.gmra.mrb[60].mxu1 %v2320_v28 }
  0xa0   : > { %1252 = vmatprep.mubr.bf16.mxu1 %v2321_v29 }
  0xa7   : > { %1253 = vmatmul.mubr.bf16.gmra.mrb[64].mxu1 %v2323_v32 }
  0xa8   : > { %1260 = vmatprep.mubr.bf16.mxu1 %v2324_v33 }
  0xaf   : > { %1261 = vmatmul.mubr.bf16.gmra.mrb[68].mxu1 %v2326_v35 }
  0xb0   : > { %1268 = vmatprep.mubr.bf16.mxu1 %v2327_v36 }
  0xb7   : > { %1269 = vmatmul.mubr.bf16.gmra.mrb[72].mxu1 %v2329_v37 }
  0xb8   : > { %1276 = vmatprep.mubr.bf16.mxu1 %v2330_v38 }
  0xbf   : > { %1277 = vmatmul.mubr.bf16.gmra.mrb[76].mxu1 %v2332_v39 }
  0xfa   : > { %v1957_v40 = vpop.f32.mrb[0].mxu1  ;;  %v1885_v46 = vpop.f32.mrb[0].mxu0 }
  0xfb   : > { %v1958_v41 = vpop.f32.mrb[1].mxu1  ;;  %v1886_v48 = vpop.f32.mrb[1].mxu0 }
  0xfc   : > { %v2600_v42 = vadd.f32 %v1958_v41, %v1957_v40  ;;  %v1960_v43 = vpop.f32.mrb[2].mxu1  ;;  %v1887_v50 = vadd.f32 %v1886_v48, %v1885_v46  ;;  %v1888_v51 = vpop.f32.mrb[2].mxu0 }
  0xfd   : > { %v1961_v44 = vpop.f32.mrb[3].mxu1  ;;  %v1889_v54 = vpop.f32.mrb[3].mxu0 }
  0xfe   : > { %v2602_v45 = vadd.f32 %v1961_v44, %v1960_v43  ;;  %v1890_v56 = vadd.f32 %v1889_v54, %v1888_v51 }
 0x102   : > { %v1963_v47 = vpop.f32.mrb[4].mxu1  ;;  %v1891_v58 = vpop.f32.mrb[4].mxu0 }
 0x103   : > { %v1964_v49 = vpop.f32.mrb[5].mxu1  ;;  %v1892_v60 = vpop.f32.mrb[5].mxu0 }
 0x104   : > { %v2604_v52 = vadd.f32 %v1964_v49, %v1963_v47  ;;  %v1966_v53 = vpop.f32.mrb[6].mxu1  ;;  %v1893_v62 = vadd.f32 %v1892_v60, %v1891_v58  ;;  %v1894_v63 = vpop.f32.mrb[6].mxu0 }
 0x105   : > { %v1967_v55 = vpop.f32.mrb[7].mxu1  ;;  %v1895_v2 = vpop.f32.mrb[7].mxu0 }
 0x106   : > { %v2606_v57 = vadd.f32 %v1967_v55, %v1966_v53  ;;  %v1896_v4 = vadd.f32 %v1895_v2, %v1894_v63 }
 0x10a   : > { %v1969_v59 = vpop.f32.mrb[8].mxu1  ;;  %v1897_v6 = vpop.f32.mrb[8].mxu0 }
 0x10b   : > { %v1970_v61 = vpop.f32.mrb[9].mxu1  ;;  %v1898_v8 = vpop.f32.mrb[9].mxu0 }
 0x10c   : > { %v2608_v0 = vadd.f32 %v1970_v61, %v1969_v59  ;;  %v1972_v1 = vpop.f32.mrb[10].mxu1  ;;  %v1899_v10 = vadd.f32 %v1898_v8, %v1897_v6  ;;  %v1900_v11 = vpop.f32.mrb[10].mxu0 }
 0x10d   : > { %v1973_v3 = vpop.f32.mrb[11].mxu1  ;;  %v1901_v14 = vpop.f32.mrb[11].mxu0 }
 0x10e   : > { %v2610_v5 = vadd.f32 %v1973_v3, %v1972_v1  ;;  %v1902_v16 = vadd.f32 %v1901_v14, %v1900_v11 }
 0x112   : > { %v1975_v7 = vpop.f32.mrb[12].mxu1  ;;  %v1903_v18 = vpop.f32.mrb[12].mxu0 }
 0x113   : > { %v1976_v9 = vpop.f32.mrb[13].mxu1  ;;  %v1904_v20 = vpop.f32.mrb[13].mxu0 }
 0x114   : > { %v2612_v12 = vadd.f32 %v1976_v9, %v1975_v7  ;;  %v1978_v13 = vpop.f32.mrb[14].mxu1  ;;  %v1905_v22 = vadd.f32 %v1904_v20, %v1903_v18  ;;  %v1906_v23 = vpop.f32.mrb[14].mxu0 }
 0x115   : > { %v1979_v15 = vpop.f32.mrb[15].mxu1  ;;  %v1907_v26 = vpop.f32.mrb[15].mxu0 }
 0x116   : > { %v2614_v17 = vadd.f32 %v1979_v15, %v1978_v13  ;;  %v1908_v28 = vadd.f32 %v1907_v26, %v1906_v23 }
 0x11a   : > { %v1997_v19 = vpop.f32.mrb[16].mxu1  ;;  %v1909_v32 = vpop.f32.mrb[16].mxu0 }
 0x11b   : > { %v1998_v21 = vpop.f32.mrb[17].mxu1  ;;  %v1910_v35 = vpop.f32.mrb[17].mxu0 }
 0x11c   : > { %v1999_v24 = vadd.f32 %v1998_v21, %v1997_v19  ;;  %v2000_v25 = vpop.f32.mrb[18].mxu1  ;;  %v1911_v37 = vadd.f32 %v1910_v35, %v1909_v32  ;;  %v1912_v38 = vpop.f32.mrb[18].mxu0 }
 0x11d   : > { %v2001_v27 = vpop.f32.mrb[19].mxu1  ;;  %v1913_v41 = vpop.f32.mrb[19].mxu0 }
 0x11e   : > { %v1159_v29 = vadd.f32 %v1999_v24, %v1887_v50  ;;  %v2002_v30 = vadd.f32 %v2001_v27, %v2000_v25  ;;  %v1914_v44 = vadd.f32 %v1913_v41, %v1912_v38 }
 0x120   : > { %v1162_v31 = vadd.f32 %v2002_v30, %v1890_v56 }
 0x122   : > { %v2003_v33 = vpop.f32.mrb[20].mxu1  ;;  %v1384_v34 = vpack.c.bf16 %v1162_v31, %v1159_v29  ;;  %v1915_v49 = vpop.f32.mrb[20].mxu0 }
 0x123   : > { %v2004_v36 = vpop.f32.mrb[21].mxu1  ;;  %v1916_v53 = vpop.f32.mrb[21].mxu0 }
 0x124   : > { %v2005_v39 = vadd.f32 %v2004_v36, %v2003_v33  ;;  %v2006_v40 = vpop.f32.mrb[22].mxu1  ;;  %2133 = vmatprep.mubr.bf16.mxu0 %v1384_v34  ;;  %v1917_v55 = vadd.f32 %v1916_v53, %v1915_v49  ;;  %v1918_v56 = vpop.f32.mrb[22].mxu0 }
 0x125   : > { %v2007_v43 = vpop.f32.mrb[23].mxu1  ;;  %v1919_v60 = vpop.f32.mrb[23].mxu0 }
 0x126   : > { %v1167_v46 = vadd.f32 %v2005_v39, %v1893_v62  ;;  %v2008_v47 = vadd.f32 %v2007_v43, %v2006_v40  ;;  %v1920_v63 = vadd.f32 %v1919_v60, %v1918_v56 }
 0x128   : > { %v1170_v48 = vadd.f32 %v2008_v47, %v1896_v4 }
 0x12a   : > { %v1385_v50 = vpack.c.bf16 %v1170_v48, %v1167_v46  ;;  %v2009_v51 = vpop.f32.mrb[24].mxu1  ;;  %v1921_v6 = vpop.f32.mrb[24].mxu0 }
 0x12b   : > { %v2010_v54 = vpop.f32.mrb[25].mxu1  ;;  %v1922_v4 = vpop.f32.mrb[25].mxu0 }
 0x12c   : > { %v2011_v58 = vadd.f32 %v2010_v54, %v2009_v51  ;;  %v2012_v59 = vpop.f32.mrb[26].mxu1  ;;  %2134 = vmatmul.mubr.bf16.vlgmr.msra.gmra.mrb[48].mxu0 %v1385_v50  ;;  %v1923_v9 = vadd.f32 %v1922_v4, %v1921_v6  ;;  %v1924_v11 = vpop.f32.mrb[26].mxu0 }
 0x12d   : > { %v2013_v61 = vpop.f32.mrb[27].mxu1  ;;  %v1925_v15 = vpop.f32.mrb[27].mxu0 }
 0x12e   : > { %v1175_v1 = vadd.f32 %v2011_v58, %v1899_v10  ;;  %v2014_v2 = vadd.f32 %v2013_v61, %v2012_v59  ;;  %v1926_v19 = vadd.f32 %v1925_v15, %v1924_v11 }
 0x130   : > { %v1178_v3 = vadd.f32 %v2014_v2, %v1902_v16 }
 0x132   : > { %v2015_v62 = vpop.f32.mrb[28].mxu1  ;;  %v1386_v7 = vpack.c.bf16 %v1178_v3, %v1175_v1  ;;  %v1927_v24 = vpop.f32.mrb[28].mxu0 }
 0x133   : > { %v2016_v8 = vpop.f32.mrb[29].mxu1  ;;  %v1928_v16 = vpop.f32.mrb[29].mxu0 }
 0x134   : > { %v2017_v13 = vadd.f32 %v2016_v8, %v2015_v62  ;;  %v2018_v14 = vpop.f32.mrb[30].mxu1  ;;  %2137 = vmatprep.mubr.bf16.mxu0 %v1386_v7  ;;  %v1929_v27 = vadd.f32 %v1928_v16, %v1927_v24  ;;  %v1930_v29 = vpop.f32.mrb[30].mxu0 }
 0x135   : > { %v2019_v18 = vpop.f32.mrb[31].mxu1  ;;  %v1931_v32 = vpop.f32.mrb[31].mxu0 }
 0x136   : > { %v1183_v20 = vadd.f32 %v2017_v13, %v1905_v22  ;;  %v2020_v21 = vadd.f32 %v2019_v18, %v2018_v14  ;;  %v1932_v34 = vadd.f32 %v1931_v32, %v1930_v29 }
 0x138   : > { %v1186_v23 = vadd.f32 %v2020_v21, %v1908_v28 }
 0x13a   : > { %v2021_v10 = vpop.f32.mrb[32].mxu1  ;;  %v1387_v25 = vpack.c.bf16 %v1186_v23, %v1183_v20  ;;  %v1933_v39 = vpop.f32.mrb[32].mxu0 }
 0x13b   : > { %v2022_v26 = vpop.f32.mrb[33].mxu1  ;;  %v1934_v28 = vpop.f32.mrb[33].mxu0 }
 0x13c   : > { %v2023_v30 = vadd.f32 %v2022_v26, %v2021_v10  ;;  %v2024_v31 = vpop.f32.mrb[34].mxu1  ;;  %2138 = vmatmul.mubr.bf16.gmra.mrb[52].mxu0 %v1387_v25  ;;  %v1935_v43 = vadd.f32 %v1934_v28, %v1933_v39  ;;  %v1936_v46 = vpop.f32.mrb[34].mxu0 }
 0x13d   : > { %v2025_v33 = vpop.f32.mrb[35].mxu1  ;;  %v1937_v49 = vpop.f32.mrb[35].mxu0 }
 0x13e   : > { %v1191_v35 = vadd.f32 %v2023_v30, %v1911_v37  ;;  %v2026_v36 = vadd.f32 %v2025_v33, %v2024_v31  ;;  %v1938_v51 = vadd.f32 %v1937_v49, %v1936_v46 }
 0x140   : > { %v1194_v38 = vadd.f32 %v2026_v36, %v1914_v44 }
 0x142   : > { %v2027_v22 = vpop.f32.mrb[36].mxu1  ;;  %v1388_v40 = vpack.c.bf16 %v1194_v38, %v1191_v35  ;;  %v1939_v58 = vpop.f32.mrb[36].mxu0 }
 0x143   : > { %v2028_v41 = vpop.f32.mrb[37].mxu1  ;;  %v1940_v44 = vpop.f32.mrb[37].mxu0 }
 0x144   : > { %v2029_v47 = vadd.f32 %v2028_v41, %v2027_v22  ;;  %v2030_v48 = vpop.f32.mrb[38].mxu1  ;;  %2141 = vmatprep.mubr.bf16.mxu0 %v1388_v40  ;;  %v1941_v61 = vadd.f32 %v1940_v44, %v1939_v58  ;;  %v1942_v1 = vpop.f32.mrb[38].mxu0 }
 0x145   : > { %v2031_v50 = vpop.f32.mrb[39].mxu1  ;;  %v1943_v6 = vpop.f32.mrb[39].mxu0 }
 0x146   : > { %v1199_v53 = vadd.f32 %v2029_v47, %v1917_v55  ;;  %v2032_v54 = vadd.f32 %v2031_v50, %v2030_v48  ;;  %v1944_v7 = vadd.f32 %v1943_v6, %v1942_v1 }
 0x148   : > { %v1202_v56 = vadd.f32 %v2032_v54, %v1920_v63 }
 0x14a   : > { %v2033_v37 = vpop.f32.mrb[40].mxu1  ;;  %v1389_v59 = vpack.c.bf16 %v1202_v56, %v1199_v53  ;;  %v1945_v13 = vpop.f32.mrb[40].mxu0 }
 0x14b   : > { %v2034_v60 = vpop.f32.mrb[41].mxu1  ;;  %v1946_v63 = vpop.f32.mrb[41].mxu0 }
 0x14c   : > { %v2035_v2 = vadd.f32 %v2034_v60, %v2033_v37  ;;  %v2036_v3 = vpop.f32.mrb[42].mxu1  ;;  %2142 = vmatmul.mubr.bf16.gmra.mrb[56].mxu0 %v1389_v59  ;;  %v1947_v18 = vadd.f32 %v1946_v63, %v1945_v13  ;;  %v1948_v20 = vpop.f32.mrb[42].mxu0 }
 0x14d   : > { %v2037_v62 = vpop.f32.mrb[43].mxu1  ;;  %v1949_v24 = vpop.f32.mrb[43].mxu0 }
 0x14e   : > { %v1207_v4 = vadd.f32 %v2035_v2, %v1923_v9  ;;  %v2038_v8 = vadd.f32 %v2037_v62, %v2036_v3  ;;  %v1950_v25 = vadd.f32 %v1949_v24, %v1948_v20 }
 0x150   : > { %v1210_v11 = vadd.f32 %v2038_v8, %v1926_v19 }
 0x152   : > { %v2039_v55 = vpop.f32.mrb[44].mxu1  ;;  %v1390_v14 = vpack.c.bf16 %v1210_v11, %v1207_v4  ;;  %v1951_v30 = vpop.f32.mrb[44].mxu0 }
 0x153   : > { %v2040_v15 = vpop.f32.mrb[45].mxu1  ;;  %v1952_v19 = vpop.f32.mrb[45].mxu0 }
 0x154   : > { %v2041_v21 = vadd.f32 %v2040_v15, %v2039_v55  ;;  %v2042_v23 = vpop.f32.mrb[46].mxu1  ;;  %2145 = vmatprep.mubr.bf16.mxu0 %v1390_v14  ;;  %v1953_v33 = vadd.f32 %v1952_v19, %v1951_v30  ;;  %v1954_v35 = vpop.f32.mrb[46].mxu0 }
 0x155   : > { %v2043_v10 = vpop.f32.mrb[47].mxu1  ;;  %v1955_v39 = vpop.f32.mrb[47].mxu0 }
 0x156   : > { %v1215_v16 = vadd.f32 %v2041_v21, %v1929_v27  ;;  %v2044_v26 = vadd.f32 %v2043_v10, %v2042_v23  ;;  %v1956_v40 = vadd.f32 %v1955_v39, %v1954_v35 }
 0x158   : > { %v1218_v29 = vadd.f32 %v2044_v26, %v1932_v34 }
 0x15a   : > { %v2045_v9 = vpop.f32.mrb[48].mxu1  ;;  %v1391_v31 = vpack.c.bf16 %v1218_v29, %v1215_v16 }
 0x15b   : > { %v2046_v32 = vpop.f32.mrb[49].mxu1 }
 0x15c   : > { %v2047_v36 = vadd.f32 %v2046_v32, %v2045_v9  ;;  %v2048_v38 = vpop.f32.mrb[50].mxu1  ;;  %2146 = vmatmul.mubr.bf16.gmra.mrb[60].mxu0 %v1391_v31 }
 0x15d   : > { %v2049_v22 = vpop.f32.mrb[51].mxu1 }
 0x15e   : > { %v1223_v28 = vadd.f32 %v2047_v36, %v1935_v43  ;;  %v2050_v41 = vadd.f32 %v2049_v22, %v2048_v38 }
 0x160   : > { %v1226_v46 = vadd.f32 %v2050_v41, %v1938_v51 }
 0x162   : > { %v2051_v47 = vpop.f32.mrb[52].mxu1  ;;  %v1392_v27 = vpack.c.bf16 %v1226_v46, %v1223_v28 }
 0x163   : > { %v2052_v48 = vpop.f32.mrb[53].mxu1 }
 0x164   : > { %v2053_v34 = vadd.f32 %v2052_v48, %v2051_v47  ;;  %v2054_v49 = vpop.f32.mrb[54].mxu1  ;;  %2149 = vmatprep.mubr.bf16.mxu0 %v1392_v27 }
 0x165   : > { %v2055_v50 = vpop.f32.mrb[55].mxu1 }
 0x166   : > { %v1231_v53 = vadd.f32 %v2053_v34, %v1941_v61  ;;  %v2056_v54 = vadd.f32 %v2055_v50, %v2054_v49 }
 0x168   : > { %v1234_v56 = vadd.f32 %v2056_v54, %v1944_v7 }
 0x16a   : > { %v2057_v58 = vpop.f32.mrb[56].mxu1  ;;  %v1393_v37 = vpack.c.bf16 %v1234_v56, %v1231_v53 }
 0x16b   : > { %v2058_v59 = vpop.f32.mrb[57].mxu1 }
 0x16c   : > { %v2059_v44 = vadd.f32 %v2058_v59, %v2057_v58  ;;  %v2060_v60 = vpop.f32.mrb[58].mxu1  ;;  %2150 = vmatmul.mubr.bf16.gmra.mrb[64].mxu0 %v1393_v37 }
 0x16d   : > { %v2061_v1 = vpop.f32.mrb[59].mxu1 }
 0x16e   : > { %v1239_v43 = vadd.f32 %v2059_v44, %v1947_v18  ;;  %v2062_v2 = vadd.f32 %v2061_v1, %v2060_v60 }
 0x170   : > { %v1242_v51 = vadd.f32 %v2062_v2, %v1950_v25 }
 0x172   : > { %v2063_v3 = vpop.f32.mrb[60].mxu1  ;;  %v1394_v6 = vpack.c.bf16 %v1242_v51, %v1239_v43 }
 0x173   : > { %v2064_v62 = vpop.f32.mrb[61].mxu1 }
 0x174   : > { %v2065_v4 = vadd.f32 %v2064_v62, %v2063_v3  ;;  %v2066_v8 = vpop.f32.mrb[62].mxu1  ;;  %2153 = vmatprep.mubr.bf16.mxu0 %v1394_v6 }
 0x175   : > { %v2067_v11 = vpop.f32.mrb[63].mxu1 }
 0x176   : > { %v1247_v61 = vadd.f32 %v2065_v4, %v1953_v33  ;;  %v2068_v13 = vadd.f32 %v2067_v11, %v2066_v8 }
 0x178   : > { %v1250_v7 = vadd.f32 %v2068_v13, %v1956_v40 }
 0x17a   : > { %v2069_v55 = vpop.f32.mrb[64].mxu1  ;;  %v1395_v14 = vpack.c.bf16 %v1250_v7, %v1247_v61 }
 0x17b   : > { %v2070_v63 = vpop.f32.mrb[65].mxu1 }
 0x17c   : > { %v2071_v15 = vadd.f32 %v2070_v63, %v2069_v55  ;;  %v2072_v20 = vpop.f32.mrb[66].mxu1  ;;  %2154 = vmatmul.mubr.bf16.gmra.mrb[68].mxu0 %v1395_v14 }
 0x17d   : > { %v2073_v21 = vpop.f32.mrb[67].mxu1 }
 0x17e   : > { %v1255_v18 = vadd.f32 %v2071_v15, %v2600_v42  ;;  %v2074_v23 = vadd.f32 %v2073_v21, %v2072_v20 }
 0x180   : > { %v1258_v24 = vadd.f32 %v2074_v23, %v2602_v45 }
 0x182   : > { %v2075_v10 = vpop.f32.mrb[68].mxu1  ;;  %v1396_v25 = vpack.c.bf16 %v1258_v24, %v1255_v18 }
 0x183   : > { %v2076_v16 = vpop.f32.mrb[69].mxu1 }
 0x184   : > { %v2077_v26 = vadd.f32 %v2076_v16, %v2075_v10  ;;  %v2078_v29 = vpop.f32.mrb[70].mxu1  ;;  %2157 = vmatprep.mubr.bf16.mxu0 %v1396_v25 }
 0x185   : > { %v2079_v30 = vpop.f32.mrb[71].mxu1 }
 0x186   : > { %v1263_v9 = vadd.f32 %v2077_v26, %v2604_v52  ;;  %v2080_v31 = vadd.f32 %v2079_v30, %v2078_v29 }
 0x188   : > { %v1266_v19 = vadd.f32 %v2080_v31, %v2606_v57 }
 0x18a   : > { %v2081_v32 = vpop.f32.mrb[72].mxu1  ;;  %v1397_v33 = vpack.c.bf16 %v1266_v19, %v1263_v9 }
 0x18b   : > { %v2082_v35 = vpop.f32.mrb[73].mxu1 }
 0x18c   : > { %v2083_v36 = vadd.f32 %v2082_v35, %v2081_v32  ;;  %v2084_v42 = vpop.f32.mrb[74].mxu1  ;;  %2158 = vmatmul.mubr.bf16.gmra.mrb[72].mxu0 %v1397_v33 }
 0x18d   : > { %v2085_v38 = vpop.f32.mrb[75].mxu1 }
 0x18e   : > { %v1271_v45 = vadd.f32 %v2083_v36, %v2608_v0  ;;  %v2086_v39 = vadd.f32 %v2085_v38, %v2084_v42  ;;  %v2628_v0 = vld [vmem:[%s2711_s3] ss:$0 sm:$0xff] }
 0x190   : > { %v1274_v22 = vadd.f32 %v2086_v39, %v2610_v5 }
 0x192   : > { %v2087_v40 = vpop.f32.mrb[76].mxu1  ;;  %v1398_v28 = vpack.c.bf16 %v1274_v22, %v1271_v45 }
 0x193   : > { %v2088_v41 = vpop.f32.mrb[77].mxu1 }
 0x194   : > { %v2089_v52 = vadd.f32 %v2088_v41, %v2087_v40  ;;  %v2090_v46 = vpop.f32.mrb[78].mxu1  ;;  %2161 = vmatprep.mubr.bf16.mxu0 %v1398_v28 }
 0x195   : > { %v2091_v57 = vpop.f32.mrb[79].mxu1 }
 0x196   : > { %v1279_v47 = vadd.f32 %v2089_v52, %v2612_v12  ;;  %v2092_v27 = vadd.f32 %v2091_v57, %v2090_v46 }
 0x198   : > { %v1282_v48 = vadd.f32 %v2092_v27, %v2614_v17 }
 0x19a   : > { %v1399_v34 = vpack.c.bf16 %v1282_v48, %v1279_v47 }
 0x19c   : > { %2162 = vmatmul.mubr.bf16.gmra.mrb[76].mxu0 %v1399_v34 }
 0x1ff   : > { %v2135_v5 = vpop.f32.mrb[48].mxu0 }
 0x200   : > { %v1514_v12 = vadd.f32 %v2135_v5, %v2628_v0  ;;  %v1505_v17 = vpop.f32.mrb[49].mxu0 }
 0x201   : > { %v1506_v49 = vadd.f32 %v2628_v0, %v1505_v17  ;;  %v2136_v50 = vpop.f32.mrb[50].mxu0 }
 0x202   : > { %1634 = vst [vmem:[%s2633_s23 + $0x10] sm:$0xff] %v1514_v12  ;;  %v1517_v53 = vadd.f32 %v2136_v50, %v2628_v0  ;;  %v1508_v54 = vpop.f32.mrb[51].mxu0 }
 0x203   : > { %1632 = vst [vmem:[%s2633_s23] sm:$0xff] %v1506_v49  ;;  %v1509_v56 = vadd.f32 %v2628_v0, %v1508_v54 }
 0x204   : > { %1635 = vst [vmem:[%s2633_s23 + $0x18] sm:$0xff] %v1517_v53 }
 0x205   : > { %1633 = vst [vmem:[%s2633_s23 + $0x8] sm:$0xff] %v1509_v56 }
 0x20f   : > { %v2139_v58 = vpop.f32.mrb[52].mxu0 }
 0x210   : > { %v1530_v37 = vadd.f32 %v2139_v58, %v2628_v0  ;;  %v1521_v59 = vpop.f32.mrb[53].mxu0 }
 0x211   : > { %v1522_v44 = vadd.f32 %v2628_v0, %v1521_v59  ;;  %v2140_v60 = vpop.f32.mrb[54].mxu0 }
 0x212   : > { %1638 = vst [vmem:[%s2633_s23 + $0x30] sm:$0xff] %v1530_v37  ;;  %v1533_v1 = vadd.f32 %v2140_v60, %v2628_v0  ;;  %v1524_v43 = vpop.f32.mrb[55].mxu0 }
 0x213   : > { %1636 = vst [vmem:[%s2633_s23 + $0x20] sm:$0xff] %v1522_v44  ;;  %v1525_v2 = vadd.f32 %v2628_v0, %v1524_v43 }
 0x214   : > { %1639 = vst [vmem:[%s2633_s23 + $0x38] sm:$0xff] %v1533_v1 }
 0x215   : > { %1637 = vst [vmem:[%s2633_s23 + $0x28] sm:$0xff] %v1525_v2 }
 0x21f   : > { %v2143_v51 = vpop.f32.mrb[56].mxu0 }
 0x220   : > { %v1546_v3 = vadd.f32 %v2143_v51, %v2628_v0  ;;  %v1537_v6 = vpop.f32.mrb[57].mxu0 }
 0x221   : > { %v1538_v62 = vadd.f32 %v2628_v0, %v1537_v6  ;;  %v2144_v4 = vpop.f32.mrb[58].mxu0 }
 0x222   : > { %1642 = vst [vmem:[%s2633_s23 + $0x50] sm:$0xff] %v1546_v3  ;;  %v1549_v8 = vadd.f32 %v2144_v4, %v2628_v0  ;;  %v1540_v11 = vpop.f32.mrb[59].mxu0 }
 0x223   : > { %1640 = vst [vmem:[%s2633_s23 + $0x40] sm:$0xff] %v1538_v62  ;;  %v1541_v61 = vadd.f32 %v2628_v0, %v1540_v11 }
 0x224   : > { %1643 = vst [vmem:[%s2633_s23 + $0x58] sm:$0xff] %v1549_v8 }
 0x225   : > { %1641 = vst [vmem:[%s2633_s23 + $0x48] sm:$0xff] %v1541_v61 }
 0x22f   : > { %v2147_v13 = vpop.f32.mrb[60].mxu0 }
 0x230   : > { %v1562_v7 = vadd.f32 %v2147_v13, %v2628_v0  ;;  %v1553_v55 = vpop.f32.mrb[61].mxu0 }
 0x231   : > { %v1554_v14 = vadd.f32 %v2628_v0, %v1553_v55  ;;  %v2148_v63 = vpop.f32.mrb[62].mxu0 }
 0x232   : > { %1646 = vst [vmem:[%s2633_s23 + $0x70] sm:$0xff] %v1562_v7  ;;  %v1565_v15 = vadd.f32 %v2148_v63, %v2628_v0  ;;  %v1556_v20 = vpop.f32.mrb[63].mxu0 }
 0x233   : > { %1644 = vst [vmem:[%s2633_s23 + $0x60] sm:$0xff] %v1554_v14  ;;  %v1557_v21 = vadd.f32 %v2628_v0, %v1556_v20 }
 0x234   : > { %1647 = vst [vmem:[%s2633_s23 + $0x78] sm:$0xff] %v1565_v15 }
 0x235   : > { %1645 = vst [vmem:[%s2633_s23 + $0x68] sm:$0xff] %v1557_v21 }
 0x23f   : > { %v2151_v18 = vpop.f32.mrb[64].mxu0 }
 0x240   : > { %v1578_v23 = vadd.f32 %v2151_v18, %v2628_v0  ;;  %v1569_v24 = vpop.f32.mrb[65].mxu0 }
 0x241   : > { %v1570_v10 = vadd.f32 %v2628_v0, %v1569_v24  ;;  %v2152_v25 = vpop.f32.mrb[66].mxu0 }
 0x242   : > { %1650 = vst [vmem:[%s2633_s23 + $0x90] sm:$0xff] %v1578_v23  ;;  %v1581_v16 = vadd.f32 %v2152_v25, %v2628_v0  ;;  %v1572_v26 = vpop.f32.mrb[67].mxu0 }
 0x243   : > { %1648 = vst [vmem:[%s2633_s23 + $0x80] sm:$0xff] %v1570_v10  ;;  %v1573_v29 = vadd.f32 %v2628_v0, %v1572_v26 }
 0x244   : > { %1651 = vst [vmem:[%s2633_s23 + $0x98] sm:$0xff] %v1581_v16 }
 0x245   : > { %1649 = vst [vmem:[%s2633_s23 + $0x88] sm:$0xff] %v1573_v29 }
 0x24f   : > { %v2155_v30 = vpop.f32.mrb[68].mxu0 }
 0x250   : > { %v1594_v9 = vadd.f32 %v2155_v30, %v2628_v0  ;;  %v1585_v31 = vpop.f32.mrb[69].mxu0 }
 0x251   : > { %v1586_v19 = vadd.f32 %v2628_v0, %v1585_v31  ;;  %v2156_v32 = vpop.f32.mrb[70].mxu0 }
 0x252   : > { %1654 = vst [vmem:[%s2633_s23 + $0xb0] sm:$0xff] %v1594_v9  ;;  %v1597_v33 = vadd.f32 %v2156_v32, %v2628_v0  ;;  %v1588_v35 = vpop.f32.mrb[71].mxu0 }
 0x253   : > { %1652 = vst [vmem:[%s2633_s23 + $0xa0] sm:$0xff] %v1586_v19  ;;  %v1589_v36 = vadd.f32 %v2628_v0, %v1588_v35 }
 0x254   : > { %1655 = vst [vmem:[%s2633_s23 + $0xb8] sm:$0xff] %v1597_v33 }
 0x255   : > { %1653 = vst [vmem:[%s2633_s23 + $0xa8] sm:$0xff] %v1589_v36 }
 0x25f   : > { %v2159_v42 = vpop.f32.mrb[72].mxu0 }
 0x260   : > { %v1610_v38 = vadd.f32 %v2159_v42, %v2628_v0  ;;  %v1601_v45 = vpop.f32.mrb[73].mxu0 }
 0x261   : > { %v1602_v39 = vadd.f32 %v2628_v0, %v1601_v45  ;;  %v2160_v22 = vpop.f32.mrb[74].mxu0 }
 0x262   : > { %1658 = vst [vmem:[%s2633_s23 + $0xd0] sm:$0xff] %v1610_v38  ;;  %v1613_v40 = vadd.f32 %v2160_v22, %v2628_v0  ;;  %v1604_v28 = vpop.f32.mrb[75].mxu0 }
 0x263   : > { %1656 = vst [vmem:[%s2633_s23 + $0xc0] sm:$0xff] %v1602_v39  ;;  %v1605_v41 = vadd.f32 %v2628_v0, %v1604_v28 }
 0x264   : > { %1659 = vst [vmem:[%s2633_s23 + $0xd8] sm:$0xff] %v1613_v40 }
 0x265   : > { %1657 = vst [vmem:[%s2633_s23 + $0xc8] sm:$0xff] %v1605_v41 }
 0x26f   : > { %v2163_v52 = vpop.f32.mrb[76].mxu0 }
 0x270   : > { %v1626_v46 = vadd.f32 %v2163_v52, %v2628_v0  ;;  %v1617_v57 = vpop.f32.mrb[77].mxu0 }
 0x271   : > { %v1618_v47 = vadd.f32 %v2628_v0, %v1617_v57  ;;  %v2164_v27 = vpop.f32.mrb[78].mxu0 }
 0x272   : > { %1662 = vst [vmem:[%s2633_s23 + $0xf0] sm:$0xff] %v1626_v46  ;;  %v1629_v48 = vadd.f32 %v2164_v27, %v2628_v0  ;;  %v1620_v34 = vpop.f32.mrb[79].mxu0 }
 0x273   : > { %1660 = vst [vmem:[%s2633_s23 + $0xe0] sm:$0xff] %v1618_v47  ;;  %v1621_v5 = vadd.f32 %v2628_v0, %v1620_v34 }
 0x274   : > { %1663 = vst [vmem:[%s2633_s23 + $0xf8] sm:$0xff] %v1629_v48 }
 0x275   : > { %1661 = vst [vmem:[%s2633_s23 + $0xe8] sm:$0xff] %v1621_v5 }
 0x276 PF: > { %s14_s17 = sadd.s32 1, %s2363_s17   ;;  %s2713_s15 = smov %s2359_s16 }
 0x277   : > { %p11_p5 = scmp.ge.s32.totalorder %s14_s17, 4   ;;  %s2714_s16 = smov %s2716_s18 }
 0x279   :  { %13 = sbr.rel (!%p11_p5) target bundleno = 2 (0x2), region = 77 }

// kernel: gcn_forward.2
= control target key start
LH: loop header
LB: loop body
LE: loop exit
PB: predicated region body
PF: predicated region fallthrough
CT: control target
= control target key end

     0   :  { %s2709_s15 = smov 0   ;;  %s2711_s16 = smov 0   ;;  %s3011_s0 = inlined_call_operand.vmem [shape: bf16[512,512], index: 0, kind: input, shape index: {}]   ;;  %s3012_s1 = inlined_call_operand.vmem [shape: bf16[512,128], index: 1, kind: input, shape index: {}]   ;;  %s3013_s2 = inlined_call_operand.vmem [shape: bf16[128,128], index: 2, kind: input, shape index: {}]   ;;  %s3014_s3 = inlined_call_operand.vmem [shape: f32[1,128], index: 3, kind: input, shape index: {}]   ;;  %s3015_s4 = inlined_call_operand.vmem [shape: bf16[512,128], index: 4, kind: output, shape index: {}]  }
   0x1   :  { %s2713_s17 = smov 0  }
   0x2 LB: > { %s26_s18 = sadd.s32 1, %s2678_s16  ;;  %p1915_p0 = scmp.ge.s32.totalorder %s2682_s17, 1  ;;  %s2682_s17 = sphi %s2713_s17, %s14_s17   ;;  %s2678_s16 = sphi %s2711_s16, %s3017_s16   ;;  %s2674_s15 = sphi %s2709_s15, %s3016_s15  }
   0x3   : > { %p28_p1 = scmp.ge.s32.totalorder %s26_s18, 2  ;;  %p194_p2 = scmp.lt.s32.totalorder %s2682_s17, 3 }
   0x5   : > { %s3019_s18 = smov (%p28_p1, %s26_s18), 0  ;;  %p195_p3 = pnand %p1915_p0, %p194_p2 }
   0x6   : > { %v2524_v0 = vld [vmem:[%s3012_s1 + $0x40] sm:$0xff] (!%p195_p3)   ;;  %s1916_s21 = sshll.u32 (!%p195_p3), %s2674_s15, 5  ;;  %v2526_v2 = vld [vmem:[%s3012_s1 + $0x48] sm:$0xff] (!%p195_p3)   ;;  %v2528_v4 = vld [vmem:[%s3012_s1 + $0x50] sm:$0xff] (!%p195_p3)  }
   0x7   : > { %198 = sbr.rel (%p195_p3) target bundleno = 634 (0x27a), region = 36  ;;  %v2525_v1 = vld [vmem:[%s3012_s1] sm:$0xff] (!%p195_p3)   ;;  %2484 = vmatprep.subr.bf16.mxu1 (!%p195_p3), %v2524_v0  ;;  %2188 = vmatprep.subr.bf16.mxu0 (!%p195_p3), %v2524_v0  ;;  %v2527_v3 = vld [vmem:[%s3012_s1 + $0x8] sm:$0xff] (!%p195_p3)   ;;  %p232_p4 = scmp.lt.s32.totalorder (!%p195_p3), %s1916_s21, 63  ;;  %v2529_v5 = vld [vmem:[%s3012_s1 + $0x10] sm:$0xff] (!%p195_p3)  }
   0x8   : > { %2492 = vmatpush3.bf16.msra.mxu1 (!%p195_p3), %v2525_v1  ;;  %2189 = vmatpush3.bf16.msra.mxu0 (!%p195_p3), %v2525_v1  ;;  %v2530_v6 = vld [vmem:[%s3012_s1 + $0x58] sm:$0xff] (!%p195_p3)   ;;  %v2532_v8 = vld [vmem:[%s3012_s1 + $0x60] sm:$0xff] (!%p195_p3)   ;;  %v2534_v10 = vld [vmem:[%s3012_s1 + $0x68] sm:$0xff] (!%p195_p3)  }
   0x9   : > { %2485 = vmatprep.subr.bf16.mxu1 (!%p195_p3), %v2526_v2  ;;  %2190 = vmatprep.subr.bf16.mxu0 (!%p195_p3), %v2526_v2  ;;  %v2531_v7 = vld [vmem:[%s3012_s1 + $0x18] sm:$0xff] (!%p195_p3)   ;;  %v2533_v9 = vld [vmem:[%s3012_s1 + $0x20] sm:$0xff] (!%p195_p3)   ;;  %v2535_v12 = vld [vmem:[%s3012_s1 + $0x28] sm:$0xff] (!%p195_p3)  }
   0xa   : > { %v2536_v13 = vld [vmem:[%s3012_s1 + $0x70] sm:$0xff] (!%p195_p3)   ;;  %v2538_v15 = vld [vmem:[%s3012_s1 + $0x78] sm:$0xff] (!%p195_p3)   ;;  %v2543_v17 = vld [vmem:[%s3012_s1 + $0xc0] sm:$0xff] (!%p195_p3)  }
   0xb   : > { %v2537_v14 = vld [vmem:[%s3012_s1 + $0x30] sm:$0xff] (!%p195_p3)   ;;  %v2539_v16 = vld [vmem:[%s3012_s1 + $0x38] sm:$0xff] (!%p195_p3)   ;;  %v2544_v19 = vld [vmem:[%s3012_s1 + $0x80] sm:$0xff] (!%p195_p3)  }
   0xc   : > { %2493 = vmatpush3.bf16.msra.mxu1 (!%p195_p3), %v2527_v3  ;;  %2191 = vmatpush3.bf16.msra.mxu0 (!%p195_p3), %v2527_v3  ;;  %v2545_v21 = vld [vmem:[%s3012_s1 + $0xc8] sm:$0xff] (!%p195_p3)   ;;  %v2550_v24 = vld [vmem:[%s3012_s1 + $0xd0] sm:$0xff] (!%p195_p3)   ;;  %v2552_v28 = vld [vmem:[%s3012_s1 + $0xd8] sm:$0xff] (!%p195_p3)  }
   0xd   : > { %2486 = vmatprep.subr.bf16.mxu1 (!%p195_p3), %v2528_v4  ;;  %2192 = vmatprep.subr.bf16.mxu0 (!%p195_p3), %v2528_v4  ;;  %v2546_v22 = vld [vmem:[%s3012_s1 + $0x88] sm:$0xff] (!%p195_p3)   ;;  %v2551_v25 = vld [vmem:[%s3012_s1 + $0x90] sm:$0xff] (!%p195_p3)   ;;  %v2553_v31 = vld [vmem:[%s3012_s1 + $0x98] sm:$0xff] (!%p195_p3)  }
   0xe   : > { %s3021_s21 = smov (!%p232_p4, %s1916_s21), 63  ;;  %v2557_v33 = vld [vmem:[%s3012_s1 + $0xe0] sm:$0xff]   ;;  %v2559_v38 = vld [vmem:[%s3012_s1 + $0xe8] sm:$0xff]   ;;  %v2564_v41 = vld [vmem:[%s3012_s1 + $0xf0] sm:$0xff]  }
   0xf   : > { %s2060_s10 = sshll.u32 %s3021_s21, 4  ;;  %v2558_v36 = vld [vmem:[%s3012_s1 + $0xa0] sm:$0xff]   ;;  %v2560_v39 = vld [vmem:[%s3012_s1 + $0xa8] sm:$0xff]   ;;  %v2565_v44 = vld [vmem:[%s3012_s1 + $0xb0] sm:$0xff]   ;;  %s1920_s19 = sshll.u32 %s3021_s21, 2 }
  0x10   : > { %2494 = vmatpush3.bf16.msra.mxu1 %v2529_v5  ;;  %2193 = vmatpush3.bf16.msra.mxu0 %v2529_v5  ;;  %s2760_s15 = scalar_lea.vmem %s3011_s0, %s2060_s10  ;;  %v2566_v46 = vld [vmem:[%s3012_s1 + $0xf8] sm:$0xff]   ;;  %s2956_s23 = scalar_lea.vmem %s3015_s4, %s1920_s19 }
  0x11   : > { %2487 = vmatprep.subr.bf16.mxu1 %v2530_v6  ;;  %2194 = vmatprep.subr.bf16.mxu0 %v2530_v6  ;;  %v2542_v11 = vld [vmem:[%s2760_s15 + $0x184] ss:$16 sps:$4 sm:$0xff]   ;;  %v2540_v18 = vld [vmem:[%s2760_s15 + $0x180] ss:$16 sps:$4 sm:$0xff]   ;;  %v2573_v45 = vld [vmem:[%s2760_s15 + $0xc] ss:$16 sps:$4 sm:$0xff]  }
  0x12   : > { %1091 = vmatprep.mubr.bf16.mxu1 %v2542_v11  ;;  %v2547_v20 = vld [vmem:[%s2760_s15 + $0x1a4] ss:$16 sps:$4 sm:$0xff]   ;;  %v2549_v23 = vld [vmem:[%s2760_s15 + $0x1a0] ss:$16 sps:$4 sm:$0xff]   ;;  %v2567_v47 = vld [vmem:[%s3012_s1 + $0xb8] sm:$0xff]  }
  0x13   : > { %v2568_v26 = vld [vmem:[%s2760_s15] ss:$16 sps:$4 sm:$0xff]   ;;  %v2570_v27 = vld [vmem:[%s2760_s15 + $0x4] ss:$16 sps:$4 sm:$0xff]   ;;  %v2571_v48 = vld [vmem:[%s2760_s15 + $0x8] ss:$16 sps:$4 sm:$0xff]  }
  0x14   : > { %2495 = vmatpush3.bf16.msra.mxu1 %v2531_v7  ;;  %2195 = vmatpush3.bf16.msra.mxu0 %v2531_v7  ;;  %v2554_v29 = vld [vmem:[%s2760_s15 + $0x1c4] ss:$16 sps:$4 sm:$0xff]   ;;  %v2556_v32 = vld [vmem:[%s2760_s15 + $0x1c0] ss:$16 sps:$4 sm:$0xff]   ;;  %v2576_v51 = vld [vmem:[%s2760_s15 + $0x2c] ss:$16 sps:$4 sm:$0xff]  }
  0x15   : > { %2488 = vmatprep.subr.bf16.mxu1 %v2532_v8  ;;  %2196 = vmatprep.subr.bf16.mxu0 %v2532_v8  ;;  %v2574_v30 = vld [vmem:[%s2760_s15 + $0x24] ss:$16 sps:$4 sm:$0xff]   ;;  %v2578_v34 = vld [vmem:[%s2760_s15 + $0x20] ss:$16 sps:$4 sm:$0xff]   ;;  %v2579_v53 = vld [vmem:[%s2760_s15 + $0x28] ss:$16 sps:$4 sm:$0xff]  }
  0x16   : > { %995 = vmatprep.mubr.bf16.mxu0 %v2570_v27  ;;  %v2580_v35 = vld [vmem:[%s2760_s15 + $0x44] ss:$16 sps:$4 sm:$0xff]   ;;  %v2563_v40 = vld [vmem:[%s2760_s15 + $0x1e0] ss:$16 sps:$4 sm:$0xff]   ;;  %v2582_v55 = vld [vmem:[%s2760_s15 + $0x4c] ss:$16 sps:$4 sm:$0xff]  }
  0x17   : > { %v2561_v37 = vld [vmem:[%s2760_s15 + $0x1e4] ss:$16 sps:$4 sm:$0xff]   ;;  %v2584_v42 = vld [vmem:[%s2760_s15 + $0x40] ss:$16 sps:$4 sm:$0xff]   ;;  %v2585_v57 = vld [vmem:[%s2760_s15 + $0x48] ss:$16 sps:$4 sm:$0xff]  }
  0x18   : > { %2496 = vmatpush3.bf16.msra.mxu1 %v2533_v9  ;;  %2197 = vmatpush3.bf16.msra.mxu0 %v2533_v9  ;;  %v2586_v43 = vld [vmem:[%s2760_s15 + $0x64] ss:$16 sps:$4 sm:$0xff]   ;;  %v2590_v49 = vld [vmem:[%s2760_s15 + $0x60] ss:$16 sps:$4 sm:$0xff]   ;;  %v2588_v59 = vld [vmem:[%s2760_s15 + $0x6c] ss:$16 sps:$4 sm:$0xff]  }
  0x19   : > { %2489 = vmatprep.subr.bf16.mxu1 %v2534_v10  ;;  %2198 = vmatprep.subr.bf16.mxu0 %v2534_v10  ;;  %v2592_v50 = vld [vmem:[%s2760_s15 + $0x84] ss:$16 sps:$4 sm:$0xff]   ;;  %v2596_v52 = vld [vmem:[%s2760_s15 + $0x80] ss:$16 sps:$4 sm:$0xff]   ;;  %v2591_v61 = vld [vmem:[%s2760_s15 + $0x68] ss:$16 sps:$4 sm:$0xff]  }
  0x1a   : > { %v2598_v54 = vld [vmem:[%s2760_s15 + $0xa4] ss:$16 sps:$4 sm:$0xff]   ;;  %v2602_v56 = vld [vmem:[%s2760_s15 + $0xa0] ss:$16 sps:$4 sm:$0xff]   ;;  %v2594_v63 = vld [vmem:[%s2760_s15 + $0x8c] ss:$16 sps:$4 sm:$0xff]  }
  0x1b   : > { %v2604_v58 = vld [vmem:[%s2760_s15 + $0xc4] ss:$16 sps:$4 sm:$0xff]   ;;  %v2608_v60 = vld [vmem:[%s2760_s15 + $0xc0] ss:$16 sps:$4 sm:$0xff]   ;;  %v2597_v1 = vld [vmem:[%s2760_s15 + $0x88] ss:$16 sps:$4 sm:$0xff]  }
  0x1c   : > { %2497 = vmatpush3.bf16.msra.mxu1 %v2535_v12  ;;  %2199 = vmatpush3.bf16.msra.mxu0 %v2535_v12  ;;  %v2610_v62 = vld [vmem:[%s2760_s15 + $0xe4] ss:$16 sps:$4 sm:$0xff]   ;;  %v2614_v0 = vld [vmem:[%s2760_s15 + $0xe0] ss:$16 sps:$4 sm:$0xff]   ;;  %v2600_v3 = vld [vmem:[%s2760_s15 + $0xac] ss:$16 sps:$4 sm:$0xff]  }
  0x1d   : > { %2490 = vmatprep.subr.bf16.mxu1 %v2536_v13  ;;  %2200 = vmatprep.subr.bf16.mxu0 %v2536_v13  ;;  %v2616_v2 = vld [vmem:[%s2760_s15 + $0x104] ss:$16 sps:$4 sm:$0xff]   ;;  %v2620_v4 = vld [vmem:[%s2760_s15 + $0x100] ss:$16 sps:$4 sm:$0xff]   ;;  %v2603_v5 = vld [vmem:[%s2760_s15 + $0xa8] ss:$16 sps:$4 sm:$0xff]  }
  0x1e   : > { %v2622_v6 = vld [vmem:[%s2760_s15 + $0x124] ss:$16 sps:$4 sm:$0xff]   ;;  %v2606_v7 = vld [vmem:[%s2760_s15 + $0xcc] ss:$16 sps:$4 sm:$0xff]   ;;  %v2626_v8 = vld [vmem:[%s2760_s15 + $0x120] ss:$16 sps:$4 sm:$0xff]  }
  0x1f   : > { %v2609_v9 = vld [vmem:[%s2760_s15 + $0xc8] ss:$16 sps:$4 sm:$0xff]   ;;  %v2628_v10 = vld [vmem:[%s2760_s15 + $0x144] ss:$16 sps:$4 sm:$0xff]   ;;  %v2612_v11 = vld [vmem:[%s2760_s15 + $0xec] ss:$16 sps:$4 sm:$0xff]  }
  0x20   : > { %2498 = vmatpush3.bf16.msra.mxu1 %v2537_v14  ;;  %2201 = vmatpush3.bf16.msra.mxu0 %v2537_v14  ;;  %v2632_v12 = vld [vmem:[%s2760_s15 + $0x140] ss:$16 sps:$4 sm:$0xff]   ;;  %v2615_v13 = vld [vmem:[%s2760_s15 + $0xe8] ss:$16 sps:$4 sm:$0xff]   ;;  %v2634_v14 = vld [vmem:[%s2760_s15 + $0x164] ss:$16 sps:$4 sm:$0xff]  }
  0x21   : > { %2491 = vmatprep.subr.bf16.mxu1 %v2538_v15  ;;  %2202 = vmatprep.subr.bf16.mxu0 %v2538_v15  ;;  %v2618_v15 = vld [vmem:[%s2760_s15 + $0x10c] ss:$16 sps:$4 sm:$0xff]   ;;  %v2656_v27 = vld [vmem:[%s3013_s2 + $0x20] sm:$0xff]  }
  0x24   : > { %2499 = vmatpush3.bf16.msra.mxu1 %v2539_v16  ;;  %2203 = vmatpush3.bf16.msra.mxu0 %v2539_v16  ;;  %v2638_v16 = vld [vmem:[%s2760_s15 + $0x160] ss:$16 sps:$4 sm:$0xff]  }
  0x25   : > { %2300 = vmatprep.subr.bf16.mxu1 %v2543_v17  ;;  %v2621_v17 = vld [vmem:[%s2760_s15 + $0x108] ss:$16 sps:$4 sm:$0xff]  }
  0x27   : > { %1092 = vmatmul.mubr.bf16.vlgmr.msra.gmra.mrb[0].mxu1 %v2540_v18  ;;  %996 = vmatmul.mubr.bf16.vlgmr.msra.gmra.mrb[0].mxu0 %v2568_v26  ;;  %v2624_v18 = vld [vmem:[%s2760_s15 + $0x12c] ss:$16 sps:$4 sm:$0xff]  }
  0x28   : > { %2301 = vmatpush3.bf16.msra.mxu1 %v2544_v19  ;;  %1099 = vmatprep.mubr.bf16.mxu1 %v2547_v20  ;;  %v2652_v19 = vld [vmem:[%s3013_s2] sm:$0xff]   ;;  %v2627_v20 = vld [vmem:[%s2760_s15 + $0x128] ss:$16 sps:$4 sm:$0xff]  }
  0x29   : > { %2302 = vmatprep.subr.bf16.mxu1 %v2545_v21  ;;  %1003 = vmatprep.mubr.bf16.mxu0 %v2574_v30  ;;  %v2630_v21 = vld [vmem:[%s2760_s15 + $0x14c] ss:$16 sps:$4 sm:$0xff]  }
  0x2a   : > { %2436 = vmatprep.subr.bf16.mxu0 %v2652_v19  ;;  %v2655_v26 = vld [vmem:[%s3013_s2 + $0x18] sm:$0xff]   ;;  %v2657_v30 = vld [vmem:[%s3013_s2 + $0x28] sm:$0xff]  }
  0x2b   : > { %2437 = vmatpush3.bf16.msra.mxu0 %v2652_v19 }
  0x2c   : > { %2303 = vmatpush3.bf16.msra.mxu1 %v2546_v22  ;;  %v2653_v22 = vld [vmem:[%s3013_s2 + $0x8] sm:$0xff]  }
  0x2d   : > { %2304 = vmatprep.subr.bf16.mxu1 %v2550_v24  ;;  %2438 = vmatprep.subr.bf16.mxu0 %v2653_v22  ;;  %v2633_v24 = vld [vmem:[%s2760_s15 + $0x148] ss:$16 sps:$4 sm:$0xff]  }
  0x2f   : > { %1100 = vmatmul.mubr.bf16.gmra.mrb[4].mxu1 %v2549_v23  ;;  %1004 = vmatmul.mubr.bf16.gmra.mrb[4].mxu0 %v2578_v34  ;;  %v2654_v23 = vld [vmem:[%s3013_s2 + $0x10] sm:$0xff]   ;;  %v2659_v34 = vld [vmem:[%s3013_s2 + $0x38] sm:$0xff]  }
  0x30   : > { %2305 = vmatpush3.bf16.msra.mxu1 %v2551_v25  ;;  %1107 = vmatprep.mubr.bf16.mxu1 %v2554_v29  ;;  %v2636_v25 = vld [vmem:[%s2760_s15 + $0x16c] ss:$16 sps:$4 sm:$0xff]  }
  0x31   : > { %2306 = vmatprep.subr.bf16.mxu1 %v2552_v28  ;;  %1011 = vmatprep.mubr.bf16.mxu0 %v2580_v35  ;;  %v2639_v28 = vld [vmem:[%s2760_s15 + $0x168] ss:$16 sps:$4 sm:$0xff]   ;;  %v2640_v29 = vld [vmem:[%s2760_s15 + $0x18c] ss:$16 sps:$4 sm:$0xff]  }
  0x32   : > { %2439 = vmatpush3.bf16.msra.mxu0 %v2653_v22  ;;  %v2645_v35 = vld [vmem:[%s2760_s15 + $0x1a8] ss:$16 sps:$4 sm:$0xff]  }
  0x33   : > { %2440 = vmatprep.subr.bf16.mxu0 %v2654_v23 }
  0x34   : > { %2307 = vmatpush3.bf16.msra.mxu1 %v2553_v31  ;;  %v2658_v31 = vld [vmem:[%s3013_s2 + $0x30] sm:$0xff]  }
  0x35   : > { %2308 = vmatprep.subr.bf16.mxu1 %v2557_v33  ;;  %v2643_v33 = vld [vmem:[%s2760_s15 + $0x1ac] ss:$16 sps:$4 sm:$0xff]  }
  0x36   : > { %2441 = vmatpush3.bf16.msra.mxu0 %v2654_v23 }
  0x37   : > { %1108 = vmatmul.mubr.bf16.gmra.mrb[8].mxu1 %v2556_v32  ;;  %1012 = vmatmul.mubr.bf16.gmra.mrb[8].mxu0 %v2584_v42  ;;  %v2642_v32 = vld [vmem:[%s2760_s15 + $0x188] ss:$16 sps:$4 sm:$0xff]  }
  0x38   : > { %2309 = vmatpush3.bf16.msra.mxu1 %v2558_v36  ;;  %1115 = vmatprep.mubr.bf16.mxu1 %v2561_v37  ;;  %v2646_v36 = vld [vmem:[%s2760_s15 + $0x1cc] ss:$16 sps:$4 sm:$0xff]   ;;  %v2648_v37 = vld [vmem:[%s2760_s15 + $0x1c8] ss:$16 sps:$4 sm:$0xff]  }
  0x39   : > { %2310 = vmatprep.subr.bf16.mxu1 %v2559_v38  ;;  %1019 = vmatprep.mubr.bf16.mxu0 %v2586_v43  ;;  %v2649_v38 = vld [vmem:[%s2760_s15 + $0x1ec] ss:$16 sps:$4 sm:$0xff]  }
  0x3a   : > { %2442 = vmatprep.subr.bf16.mxu0 %v2655_v26 }
  0x3b   : > { %2443 = vmatpush3.bf16.msra.mxu0 %v2655_v26 }
  0x3c   : > { %2311 = vmatpush3.bf16.msra.mxu1 %v2560_v39  ;;  %2444 = vmatprep.subr.bf16.mxu0 %v2656_v27  ;;  %v2651_v39 = vld [vmem:[%s2760_s15 + $0x1e8] ss:$16 sps:$4 sm:$0xff]  }
  0x3d   : > { %2312 = vmatprep.subr.bf16.mxu1 %v2564_v41 }
  0x3f   : > { %1116 = vmatmul.mubr.bf16.gmra.mrb[12].mxu1 %v2563_v40  ;;  %1020 = vmatmul.mubr.bf16.gmra.mrb[12].mxu0 %v2590_v49 }
  0x40   : > { %2313 = vmatpush3.bf16.msra.mxu1 %v2565_v44  ;;  %1156 = vmatprep.mubr.bf16.mxu1 %v2573_v45 }
  0x41   : > { %2314 = vmatprep.subr.bf16.mxu1 %v2566_v46  ;;  %1027 = vmatprep.mubr.bf16.mxu0 %v2592_v50 }
  0x42   : > { %2445 = vmatpush3.bf16.msra.mxu0 %v2656_v27 }
  0x43   : > { %2446 = vmatprep.subr.bf16.mxu0 %v2657_v30 }
  0x44   : > { %2315 = vmatpush3.bf16.msra.mxu1 %v2567_v47 }
  0x46   : > { %2447 = vmatpush3.bf16.msra.mxu0 %v2657_v30 }
  0x47   : > { %1157 = vmatmul.mubr.bf16.vlgmr.msra.gmra.mrb[16].mxu1 %v2571_v48  ;;  %1028 = vmatmul.mubr.bf16.gmra.mrb[16].mxu0 %v2596_v52 }
  0x48   : > { %1164 = vmatprep.mubr.bf16.mxu1 %v2576_v51  ;;  %1035 = vmatprep.mubr.bf16.mxu0 %v2598_v54 }
  0x49   : > { %2448 = vmatprep.subr.bf16.mxu0 %v2658_v31 }
  0x4a   : > { %2449 = vmatpush3.bf16.msra.mxu0 %v2658_v31 }
  0x4b   : > { %2450 = vmatprep.subr.bf16.mxu0 %v2659_v34 }
  0x4e   : > { %2451 = vmatpush3.bf16.msra.mxu0 %v2659_v34 }
  0x4f   : > { %1165 = vmatmul.mubr.bf16.gmra.mrb[20].mxu1 %v2579_v53  ;;  %1036 = vmatmul.mubr.bf16.gmra.mrb[20].mxu0 %v2602_v56 }
  0x50   : > { %1172 = vmatprep.mubr.bf16.mxu1 %v2582_v55  ;;  %1043 = vmatprep.mubr.bf16.mxu0 %v2604_v58 }
  0x57   : > { %1173 = vmatmul.mubr.bf16.gmra.mrb[24].mxu1 %v2585_v57  ;;  %1044 = vmatmul.mubr.bf16.gmra.mrb[24].mxu0 %v2608_v60 }
  0x58   : > { %1180 = vmatprep.mubr.bf16.mxu1 %v2588_v59  ;;  %1051 = vmatprep.mubr.bf16.mxu0 %v2610_v62 }
  0x5f   : > { %1181 = vmatmul.mubr.bf16.gmra.mrb[28].mxu1 %v2591_v61  ;;  %1052 = vmatmul.mubr.bf16.gmra.mrb[28].mxu0 %v2614_v0 }
  0x60   : > { %1188 = vmatprep.mubr.bf16.mxu1 %v2594_v63  ;;  %1059 = vmatprep.mubr.bf16.mxu0 %v2616_v2 }
  0x67   : > { %1189 = vmatmul.mubr.bf16.gmra.mrb[32].mxu1 %v2597_v1  ;;  %1060 = vmatmul.mubr.bf16.gmra.mrb[32].mxu0 %v2620_v4 }
  0x68   : > { %1196 = vmatprep.mubr.bf16.mxu1 %v2600_v3  ;;  %1067 = vmatprep.mubr.bf16.mxu0 %v2622_v6 }
  0x6f   : > { %1197 = vmatmul.mubr.bf16.gmra.mrb[36].mxu1 %v2603_v5  ;;  %1068 = vmatmul.mubr.bf16.gmra.mrb[36].mxu0 %v2626_v8 }
  0x70   : > { %1204 = vmatprep.mubr.bf16.mxu1 %v2606_v7  ;;  %1075 = vmatprep.mubr.bf16.mxu0 %v2628_v10 }
  0x77   : > { %1205 = vmatmul.mubr.bf16.gmra.mrb[40].mxu1 %v2609_v9  ;;  %1076 = vmatmul.mubr.bf16.gmra.mrb[40].mxu0 %v2632_v12 }
  0x78   : > { %1212 = vmatprep.mubr.bf16.mxu1 %v2612_v11  ;;  %1083 = vmatprep.mubr.bf16.mxu0 %v2634_v14 }
  0x7f   : > { %1213 = vmatmul.mubr.bf16.gmra.mrb[44].mxu1 %v2615_v13  ;;  %1084 = vmatmul.mubr.bf16.gmra.mrb[44].mxu0 %v2638_v16 }
  0x80   : > { %1220 = vmatprep.mubr.bf16.mxu1 %v2618_v15 }
  0x87   : > { %1221 = vmatmul.mubr.bf16.gmra.mrb[48].mxu1 %v2621_v17 }
  0x88   : > { %1228 = vmatprep.mubr.bf16.mxu1 %v2624_v18 }
  0x8f   : > { %1229 = vmatmul.mubr.bf16.gmra.mrb[52].mxu1 %v2627_v20 }
  0x90   : > { %1236 = vmatprep.mubr.bf16.mxu1 %v2630_v21 }
  0x97   : > { %1237 = vmatmul.mubr.bf16.gmra.mrb[56].mxu1 %v2633_v24 }
  0x98   : > { %1244 = vmatprep.mubr.bf16.mxu1 %v2636_v25 }
  0x9f   : > { %1245 = vmatmul.mubr.bf16.gmra.mrb[60].mxu1 %v2639_v28 }
  0xa0   : > { %1252 = vmatprep.mubr.bf16.mxu1 %v2640_v29 }
  0xa7   : > { %1253 = vmatmul.mubr.bf16.gmra.mrb[64].mxu1 %v2642_v32 }
  0xa8   : > { %1260 = vmatprep.mubr.bf16.mxu1 %v2643_v33 }
  0xaf   : > { %1261 = vmatmul.mubr.bf16.gmra.mrb[68].mxu1 %v2645_v35 }
  0xb0   : > { %1268 = vmatprep.mubr.bf16.mxu1 %v2646_v36 }
  0xb7   : > { %1269 = vmatmul.mubr.bf16.gmra.mrb[72].mxu1 %v2648_v37 }
  0xb8   : > { %1276 = vmatprep.mubr.bf16.mxu1 %v2649_v38 }
  0xbf   : > { %1277 = vmatmul.mubr.bf16.gmra.mrb[76].mxu1 %v2651_v39 }
  0xfa   : > { %v2276_v40 = vpop.f32.mrb[0].mxu1  ;;  %v2204_v46 = vpop.f32.mrb[0].mxu0 }
  0xfb   : > { %v2277_v41 = vpop.f32.mrb[1].mxu1  ;;  %v2205_v48 = vpop.f32.mrb[1].mxu0 }
  0xfc   : > { %v2919_v42 = vadd.f32 %v2277_v41, %v2276_v40  ;;  %v2279_v43 = vpop.f32.mrb[2].mxu1  ;;  %v2206_v50 = vadd.f32 %v2205_v48, %v2204_v46  ;;  %v2207_v51 = vpop.f32.mrb[2].mxu0 }
  0xfd   : > { %v2280_v44 = vpop.f32.mrb[3].mxu1  ;;  %v2208_v54 = vpop.f32.mrb[3].mxu0 }
  0xfe   : > { %v2921_v45 = vadd.f32 %v2280_v44, %v2279_v43  ;;  %v2209_v56 = vadd.f32 %v2208_v54, %v2207_v51 }
 0x102   : > { %v2282_v47 = vpop.f32.mrb[4].mxu1  ;;  %v2210_v58 = vpop.f32.mrb[4].mxu0 }
 0x103   : > { %v2283_v49 = vpop.f32.mrb[5].mxu1  ;;  %v2211_v60 = vpop.f32.mrb[5].mxu0 }
 0x104   : > { %v2923_v52 = vadd.f32 %v2283_v49, %v2282_v47  ;;  %v2285_v53 = vpop.f32.mrb[6].mxu1  ;;  %v2212_v62 = vadd.f32 %v2211_v60, %v2210_v58  ;;  %v2213_v63 = vpop.f32.mrb[6].mxu0 }
 0x105   : > { %v2286_v55 = vpop.f32.mrb[7].mxu1  ;;  %v2214_v2 = vpop.f32.mrb[7].mxu0 }
 0x106   : > { %v2925_v57 = vadd.f32 %v2286_v55, %v2285_v53  ;;  %v2215_v4 = vadd.f32 %v2214_v2, %v2213_v63 }
 0x10a   : > { %v2288_v59 = vpop.f32.mrb[8].mxu1  ;;  %v2216_v6 = vpop.f32.mrb[8].mxu0 }
 0x10b   : > { %v2289_v61 = vpop.f32.mrb[9].mxu1  ;;  %v2217_v8 = vpop.f32.mrb[9].mxu0 }
 0x10c   : > { %v2927_v0 = vadd.f32 %v2289_v61, %v2288_v59  ;;  %v2291_v1 = vpop.f32.mrb[10].mxu1  ;;  %v2218_v10 = vadd.f32 %v2217_v8, %v2216_v6  ;;  %v2219_v11 = vpop.f32.mrb[10].mxu0 }
 0x10d   : > { %v2292_v3 = vpop.f32.mrb[11].mxu1  ;;  %v2220_v14 = vpop.f32.mrb[11].mxu0 }
 0x10e   : > { %v2929_v5 = vadd.f32 %v2292_v3, %v2291_v1  ;;  %v2221_v16 = vadd.f32 %v2220_v14, %v2219_v11 }
 0x112   : > { %v2294_v7 = vpop.f32.mrb[12].mxu1  ;;  %v2222_v18 = vpop.f32.mrb[12].mxu0 }
 0x113   : > { %v2295_v9 = vpop.f32.mrb[13].mxu1  ;;  %v2223_v20 = vpop.f32.mrb[13].mxu0 }
 0x114   : > { %v2931_v12 = vadd.f32 %v2295_v9, %v2294_v7  ;;  %v2297_v13 = vpop.f32.mrb[14].mxu1  ;;  %v2224_v22 = vadd.f32 %v2223_v20, %v2222_v18  ;;  %v2225_v23 = vpop.f32.mrb[14].mxu0 }
 0x115   : > { %v2298_v15 = vpop.f32.mrb[15].mxu1  ;;  %v2226_v26 = vpop.f32.mrb[15].mxu0 }
 0x116   : > { %v2933_v17 = vadd.f32 %v2298_v15, %v2297_v13  ;;  %v2227_v28 = vadd.f32 %v2226_v26, %v2225_v23 }
 0x11a   : > { %v2316_v19 = vpop.f32.mrb[16].mxu1  ;;  %v2228_v32 = vpop.f32.mrb[16].mxu0 }
 0x11b   : > { %v2317_v21 = vpop.f32.mrb[17].mxu1  ;;  %v2229_v35 = vpop.f32.mrb[17].mxu0 }
 0x11c   : > { %v2318_v24 = vadd.f32 %v2317_v21, %v2316_v19  ;;  %v2319_v25 = vpop.f32.mrb[18].mxu1  ;;  %v2230_v37 = vadd.f32 %v2229_v35, %v2228_v32  ;;  %v2231_v38 = vpop.f32.mrb[18].mxu0 }
 0x11d   : > { %v2320_v27 = vpop.f32.mrb[19].mxu1  ;;  %v2232_v41 = vpop.f32.mrb[19].mxu0 }
 0x11e   : > { %v1159_v29 = vadd.f32 %v2318_v24, %v2206_v50  ;;  %v2321_v30 = vadd.f32 %v2320_v27, %v2319_v25  ;;  %v2233_v44 = vadd.f32 %v2232_v41, %v2231_v38 }
 0x120   : > { %v1162_v31 = vadd.f32 %v2321_v30, %v2209_v56 }
 0x122   : > { %v2322_v33 = vpop.f32.mrb[20].mxu1  ;;  %v1384_v34 = vpack.c.bf16 %v1162_v31, %v1159_v29  ;;  %v2234_v49 = vpop.f32.mrb[20].mxu0 }
 0x123   : > { %v2323_v36 = vpop.f32.mrb[21].mxu1  ;;  %v2235_v53 = vpop.f32.mrb[21].mxu0 }
 0x124   : > { %v2324_v39 = vadd.f32 %v2323_v36, %v2322_v33  ;;  %v2325_v40 = vpop.f32.mrb[22].mxu1  ;;  %2452 = vmatprep.mubr.bf16.mxu0 %v1384_v34  ;;  %v2236_v55 = vadd.f32 %v2235_v53, %v2234_v49  ;;  %v2237_v56 = vpop.f32.mrb[22].mxu0 }
 0x125   : > { %v2326_v43 = vpop.f32.mrb[23].mxu1  ;;  %v2238_v60 = vpop.f32.mrb[23].mxu0 }
 0x126   : > { %v1167_v46 = vadd.f32 %v2324_v39, %v2212_v62  ;;  %v2327_v47 = vadd.f32 %v2326_v43, %v2325_v40  ;;  %v2239_v63 = vadd.f32 %v2238_v60, %v2237_v56 }
 0x128   : > { %v1170_v48 = vadd.f32 %v2327_v47, %v2215_v4 }
 0x12a   : > { %v1385_v50 = vpack.c.bf16 %v1170_v48, %v1167_v46  ;;  %v2328_v51 = vpop.f32.mrb[24].mxu1  ;;  %v2240_v6 = vpop.f32.mrb[24].mxu0 }
 0x12b   : > { %v2329_v54 = vpop.f32.mrb[25].mxu1  ;;  %v2241_v4 = vpop.f32.mrb[25].mxu0 }
 0x12c   : > { %v2330_v58 = vadd.f32 %v2329_v54, %v2328_v51  ;;  %v2331_v59 = vpop.f32.mrb[26].mxu1  ;;  %2453 = vmatmul.mubr.bf16.vlgmr.msra.gmra.mrb[48].mxu0 %v1385_v50  ;;  %v2242_v9 = vadd.f32 %v2241_v4, %v2240_v6  ;;  %v2243_v11 = vpop.f32.mrb[26].mxu0 }
 0x12d   : > { %v2332_v61 = vpop.f32.mrb[27].mxu1  ;;  %v2244_v15 = vpop.f32.mrb[27].mxu0 }
 0x12e   : > { %v1175_v1 = vadd.f32 %v2330_v58, %v2218_v10  ;;  %v2333_v2 = vadd.f32 %v2332_v61, %v2331_v59  ;;  %v2245_v19 = vadd.f32 %v2244_v15, %v2243_v11 }
 0x130   : > { %v1178_v3 = vadd.f32 %v2333_v2, %v2221_v16 }
 0x132   : > { %v2334_v62 = vpop.f32.mrb[28].mxu1  ;;  %v1386_v7 = vpack.c.bf16 %v1178_v3, %v1175_v1  ;;  %v2246_v24 = vpop.f32.mrb[28].mxu0 }
 0x133   : > { %v2335_v8 = vpop.f32.mrb[29].mxu1  ;;  %v2247_v16 = vpop.f32.mrb[29].mxu0 }
 0x134   : > { %v2336_v13 = vadd.f32 %v2335_v8, %v2334_v62  ;;  %v2337_v14 = vpop.f32.mrb[30].mxu1  ;;  %2456 = vmatprep.mubr.bf16.mxu0 %v1386_v7  ;;  %v2248_v27 = vadd.f32 %v2247_v16, %v2246_v24  ;;  %v2249_v29 = vpop.f32.mrb[30].mxu0 }
 0x135   : > { %v2338_v18 = vpop.f32.mrb[31].mxu1  ;;  %v2250_v32 = vpop.f32.mrb[31].mxu0 }
 0x136   : > { %v1183_v20 = vadd.f32 %v2336_v13, %v2224_v22  ;;  %v2339_v21 = vadd.f32 %v2338_v18, %v2337_v14  ;;  %v2251_v34 = vadd.f32 %v2250_v32, %v2249_v29 }
 0x138   : > { %v1186_v23 = vadd.f32 %v2339_v21, %v2227_v28 }
 0x13a   : > { %v2340_v10 = vpop.f32.mrb[32].mxu1  ;;  %v1387_v25 = vpack.c.bf16 %v1186_v23, %v1183_v20  ;;  %v2252_v39 = vpop.f32.mrb[32].mxu0 }
 0x13b   : > { %v2341_v26 = vpop.f32.mrb[33].mxu1  ;;  %v2253_v28 = vpop.f32.mrb[33].mxu0 }
 0x13c   : > { %v2342_v30 = vadd.f32 %v2341_v26, %v2340_v10  ;;  %v2343_v31 = vpop.f32.mrb[34].mxu1  ;;  %2457 = vmatmul.mubr.bf16.gmra.mrb[52].mxu0 %v1387_v25  ;;  %v2254_v43 = vadd.f32 %v2253_v28, %v2252_v39  ;;  %v2255_v46 = vpop.f32.mrb[34].mxu0 }
 0x13d   : > { %v2344_v33 = vpop.f32.mrb[35].mxu1  ;;  %v2256_v49 = vpop.f32.mrb[35].mxu0 }
 0x13e   : > { %v1191_v35 = vadd.f32 %v2342_v30, %v2230_v37  ;;  %v2345_v36 = vadd.f32 %v2344_v33, %v2343_v31  ;;  %v2257_v51 = vadd.f32 %v2256_v49, %v2255_v46 }
 0x140   : > { %v1194_v38 = vadd.f32 %v2345_v36, %v2233_v44 }
 0x142   : > { %v2346_v22 = vpop.f32.mrb[36].mxu1  ;;  %v1388_v40 = vpack.c.bf16 %v1194_v38, %v1191_v35  ;;  %v2258_v58 = vpop.f32.mrb[36].mxu0 }
 0x143   : > { %v2347_v41 = vpop.f32.mrb[37].mxu1  ;;  %v2259_v44 = vpop.f32.mrb[37].mxu0 }
 0x144   : > { %v2348_v47 = vadd.f32 %v2347_v41, %v2346_v22  ;;  %v2349_v48 = vpop.f32.mrb[38].mxu1  ;;  %2460 = vmatprep.mubr.bf16.mxu0 %v1388_v40  ;;  %v2260_v61 = vadd.f32 %v2259_v44, %v2258_v58  ;;  %v2261_v1 = vpop.f32.mrb[38].mxu0 }
 0x145   : > { %v2350_v50 = vpop.f32.mrb[39].mxu1  ;;  %v2262_v6 = vpop.f32.mrb[39].mxu0 }
 0x146   : > { %v1199_v53 = vadd.f32 %v2348_v47, %v2236_v55  ;;  %v2351_v54 = vadd.f32 %v2350_v50, %v2349_v48  ;;  %v2263_v7 = vadd.f32 %v2262_v6, %v2261_v1 }
 0x148   : > { %v1202_v56 = vadd.f32 %v2351_v54, %v2239_v63 }
 0x14a   : > { %v2352_v37 = vpop.f32.mrb[40].mxu1  ;;  %v1389_v59 = vpack.c.bf16 %v1202_v56, %v1199_v53  ;;  %v2264_v13 = vpop.f32.mrb[40].mxu0 }
 0x14b   : > { %v2353_v60 = vpop.f32.mrb[41].mxu1  ;;  %v2265_v63 = vpop.f32.mrb[41].mxu0 }
 0x14c   : > { %v2354_v2 = vadd.f32 %v2353_v60, %v2352_v37  ;;  %v2355_v3 = vpop.f32.mrb[42].mxu1  ;;  %2461 = vmatmul.mubr.bf16.gmra.mrb[56].mxu0 %v1389_v59  ;;  %v2266_v18 = vadd.f32 %v2265_v63, %v2264_v13  ;;  %v2267_v20 = vpop.f32.mrb[42].mxu0 }
 0x14d   : > { %v2356_v62 = vpop.f32.mrb[43].mxu1  ;;  %v2268_v24 = vpop.f32.mrb[43].mxu0 }
 0x14e   : > { %v1207_v4 = vadd.f32 %v2354_v2, %v2242_v9  ;;  %v2357_v8 = vadd.f32 %v2356_v62, %v2355_v3  ;;  %v2269_v25 = vadd.f32 %v2268_v24, %v2267_v20 }
 0x150   : > { %v1210_v11 = vadd.f32 %v2357_v8, %v2245_v19 }
 0x152   : > { %v2358_v55 = vpop.f32.mrb[44].mxu1  ;;  %v1390_v14 = vpack.c.bf16 %v1210_v11, %v1207_v4  ;;  %v2270_v30 = vpop.f32.mrb[44].mxu0 }
 0x153   : > { %v2359_v15 = vpop.f32.mrb[45].mxu1  ;;  %v2271_v19 = vpop.f32.mrb[45].mxu0 }
 0x154   : > { %v2360_v21 = vadd.f32 %v2359_v15, %v2358_v55  ;;  %v2361_v23 = vpop.f32.mrb[46].mxu1  ;;  %2464 = vmatprep.mubr.bf16.mxu0 %v1390_v14  ;;  %v2272_v33 = vadd.f32 %v2271_v19, %v2270_v30  ;;  %v2273_v35 = vpop.f32.mrb[46].mxu0 }
 0x155   : > { %v2362_v10 = vpop.f32.mrb[47].mxu1  ;;  %v2274_v39 = vpop.f32.mrb[47].mxu0 }
 0x156   : > { %v1215_v16 = vadd.f32 %v2360_v21, %v2248_v27  ;;  %v2363_v26 = vadd.f32 %v2362_v10, %v2361_v23  ;;  %v2275_v40 = vadd.f32 %v2274_v39, %v2273_v35 }
 0x158   : > { %v1218_v29 = vadd.f32 %v2363_v26, %v2251_v34 }
 0x15a   : > { %v2364_v9 = vpop.f32.mrb[48].mxu1  ;;  %v1391_v31 = vpack.c.bf16 %v1218_v29, %v1215_v16 }
 0x15b   : > { %v2365_v32 = vpop.f32.mrb[49].mxu1 }
 0x15c   : > { %v2366_v36 = vadd.f32 %v2365_v32, %v2364_v9  ;;  %v2367_v38 = vpop.f32.mrb[50].mxu1  ;;  %2465 = vmatmul.mubr.bf16.gmra.mrb[60].mxu0 %v1391_v31 }
 0x15d   : > { %v2368_v22 = vpop.f32.mrb[51].mxu1 }
 0x15e   : > { %v1223_v28 = vadd.f32 %v2366_v36, %v2254_v43  ;;  %v2369_v41 = vadd.f32 %v2368_v22, %v2367_v38 }
 0x160   : > { %v1226_v46 = vadd.f32 %v2369_v41, %v2257_v51 }
 0x162   : > { %v2370_v47 = vpop.f32.mrb[52].mxu1  ;;  %v1392_v27 = vpack.c.bf16 %v1226_v46, %v1223_v28 }
 0x163   : > { %v2371_v48 = vpop.f32.mrb[53].mxu1 }
 0x164   : > { %v2372_v34 = vadd.f32 %v2371_v48, %v2370_v47  ;;  %v2373_v49 = vpop.f32.mrb[54].mxu1  ;;  %2468 = vmatprep.mubr.bf16.mxu0 %v1392_v27 }
 0x165   : > { %v2374_v50 = vpop.f32.mrb[55].mxu1 }
 0x166   : > { %v1231_v53 = vadd.f32 %v2372_v34, %v2260_v61  ;;  %v2375_v54 = vadd.f32 %v2374_v50, %v2373_v49 }
 0x168   : > { %v1234_v56 = vadd.f32 %v2375_v54, %v2263_v7 }
 0x16a   : > { %v2376_v58 = vpop.f32.mrb[56].mxu1  ;;  %v1393_v37 = vpack.c.bf16 %v1234_v56, %v1231_v53 }
 0x16b   : > { %v2377_v59 = vpop.f32.mrb[57].mxu1 }
 0x16c   : > { %v2378_v44 = vadd.f32 %v2377_v59, %v2376_v58  ;;  %v2379_v60 = vpop.f32.mrb[58].mxu1  ;;  %2469 = vmatmul.mubr.bf16.gmra.mrb[64].mxu0 %v1393_v37 }
 0x16d   : > { %v2380_v1 = vpop.f32.mrb[59].mxu1 }
 0x16e   : > { %v1239_v43 = vadd.f32 %v2378_v44, %v2266_v18  ;;  %v2381_v2 = vadd.f32 %v2380_v1, %v2379_v60 }
 0x170   : > { %v1242_v51 = vadd.f32 %v2381_v2, %v2269_v25 }
 0x172   : > { %v2382_v3 = vpop.f32.mrb[60].mxu1  ;;  %v1394_v6 = vpack.c.bf16 %v1242_v51, %v1239_v43 }
 0x173   : > { %v2383_v62 = vpop.f32.mrb[61].mxu1 }
 0x174   : > { %v2384_v4 = vadd.f32 %v2383_v62, %v2382_v3  ;;  %v2385_v8 = vpop.f32.mrb[62].mxu1  ;;  %2472 = vmatprep.mubr.bf16.mxu0 %v1394_v6 }
 0x175   : > { %v2386_v11 = vpop.f32.mrb[63].mxu1 }
 0x176   : > { %v1247_v61 = vadd.f32 %v2384_v4, %v2272_v33  ;;  %v2387_v13 = vadd.f32 %v2386_v11, %v2385_v8 }
 0x178   : > { %v1250_v7 = vadd.f32 %v2387_v13, %v2275_v40 }
 0x17a   : > { %v2388_v55 = vpop.f32.mrb[64].mxu1  ;;  %v1395_v14 = vpack.c.bf16 %v1250_v7, %v1247_v61 }
 0x17b   : > { %v2389_v63 = vpop.f32.mrb[65].mxu1 }
 0x17c   : > { %v2390_v15 = vadd.f32 %v2389_v63, %v2388_v55  ;;  %v2391_v20 = vpop.f32.mrb[66].mxu1  ;;  %2473 = vmatmul.mubr.bf16.gmra.mrb[68].mxu0 %v1395_v14 }
 0x17d   : > { %v2392_v21 = vpop.f32.mrb[67].mxu1 }
 0x17e   : > { %v1255_v18 = vadd.f32 %v2390_v15, %v2919_v42  ;;  %v2393_v23 = vadd.f32 %v2392_v21, %v2391_v20 }
 0x180   : > { %v1258_v24 = vadd.f32 %v2393_v23, %v2921_v45 }
 0x182   : > { %v2394_v10 = vpop.f32.mrb[68].mxu1  ;;  %v1396_v25 = vpack.c.bf16 %v1258_v24, %v1255_v18 }
 0x183   : > { %v2395_v16 = vpop.f32.mrb[69].mxu1 }
 0x184   : > { %v2396_v26 = vadd.f32 %v2395_v16, %v2394_v10  ;;  %v2397_v29 = vpop.f32.mrb[70].mxu1  ;;  %2476 = vmatprep.mubr.bf16.mxu0 %v1396_v25 }
 0x185   : > { %v2398_v30 = vpop.f32.mrb[71].mxu1 }
 0x186   : > { %v1263_v9 = vadd.f32 %v2396_v26, %v2923_v52  ;;  %v2399_v31 = vadd.f32 %v2398_v30, %v2397_v29 }
 0x188   : > { %v1266_v19 = vadd.f32 %v2399_v31, %v2925_v57 }
 0x18a   : > { %v2400_v32 = vpop.f32.mrb[72].mxu1  ;;  %v1397_v33 = vpack.c.bf16 %v1266_v19, %v1263_v9 }
 0x18b   : > { %v2401_v35 = vpop.f32.mrb[73].mxu1 }
 0x18c   : > { %v2402_v36 = vadd.f32 %v2401_v35, %v2400_v32  ;;  %v2403_v42 = vpop.f32.mrb[74].mxu1  ;;  %2477 = vmatmul.mubr.bf16.gmra.mrb[72].mxu0 %v1397_v33 }
 0x18d   : > { %v2404_v38 = vpop.f32.mrb[75].mxu1 }
 0x18e   : > { %v1271_v45 = vadd.f32 %v2402_v36, %v2927_v0  ;;  %v2405_v39 = vadd.f32 %v2404_v38, %v2403_v42  ;;  %v2946_v0 = vld [vmem:[%s3014_s3] ss:$0 sm:$0xff] }
 0x190   : > { %v1274_v22 = vadd.f32 %v2405_v39, %v2929_v5 }
 0x192   : > { %v2406_v40 = vpop.f32.mrb[76].mxu1  ;;  %v1398_v28 = vpack.c.bf16 %v1274_v22, %v1271_v45 }
 0x193   : > { %v2407_v41 = vpop.f32.mrb[77].mxu1 }
 0x194   : > { %v2408_v52 = vadd.f32 %v2407_v41, %v2406_v40  ;;  %v2409_v46 = vpop.f32.mrb[78].mxu1  ;;  %2480 = vmatprep.mubr.bf16.mxu0 %v1398_v28 }
 0x195   : > { %v2410_v57 = vpop.f32.mrb[79].mxu1 }
 0x196   : > { %v1279_v47 = vadd.f32 %v2408_v52, %v2931_v12  ;;  %v2411_v27 = vadd.f32 %v2410_v57, %v2409_v46 }
 0x198   : > { %v1282_v48 = vadd.f32 %v2411_v27, %v2933_v17 }
 0x19a   : > { %v1399_v34 = vpack.c.bf16 %v1282_v48, %v1279_v47 }
 0x19c   : > { %2481 = vmatmul.mubr.bf16.gmra.mrb[76].mxu0 %v1399_v34 }
 0x1ff   : > { %v2454_v5 = vpop.f32.mrb[48].mxu0 }
 0x200   : > { %v1514_v49 = vadd.f32 %v2454_v5, %v2946_v0  ;;  %v1505_v50 = vpop.f32.mrb[49].mxu0 }
 0x201   : > { %v1506_v53 = vadd.f32 %v2946_v0, %v1505_v50  ;;  %v2455_v54 = vpop.f32.mrb[50].mxu0 }
 0x202   : > { %v1517_v12 = vadd.f32 %v2455_v54, %v2946_v0  ;;  %v1508_v56 = vpop.f32.mrb[51].mxu0  ;;  %v1634_v58 = vmax.f32 %v1514_v49, 0.0 }
 0x203   : > { %v1509_v17 = vadd.f32 %v2946_v0, %v1508_v56  ;;  %v1632_v59 = vmax.f32 %v1506_v53, 0.0 }
 0x204   : > { %v1635_v37 = vmax.f32 %v1517_v12, 0.0 }
 0x205   : > { %v1633_v44 = vmax.f32 %v1509_v17, 0.0 }
 0x206   : > { %v2101_v60 = vpack.c.bf16 %v1635_v37, %v1634_v58 }
 0x207   : > { %v2096_v1 = vpack.c.bf16 %v1633_v44, %v1632_v59 }
 0x208   : > { %2173 = vst [vmem:[%s2956_s23 + $0x8] sm:$0xff] %v2101_v60  }
 0x209   : > { %2097 = vst [vmem:[%s2956_s23] sm:$0xff] %v2096_v1  }
 0x20f   : > { %v2458_v43 = vpop.f32.mrb[52].mxu0 }
 0x210   : > { %v1530_v2 = vadd.f32 %v2458_v43, %v2946_v0  ;;  %v1521_v51 = vpop.f32.mrb[53].mxu0 }
 0x211   : > { %v1522_v3 = vadd.f32 %v2946_v0, %v1521_v51  ;;  %v2459_v6 = vpop.f32.mrb[54].mxu0 }
 0x212   : > { %v1533_v62 = vadd.f32 %v2459_v6, %v2946_v0  ;;  %v1524_v4 = vpop.f32.mrb[55].mxu0  ;;  %v1638_v11 = vmax.f32 %v1530_v2, 0.0 }
 0x213   : > { %v1525_v8 = vadd.f32 %v2946_v0, %v1524_v4  ;;  %v1636_v13 = vmax.f32 %v1522_v3, 0.0 }
 0x214   : > { %v1639_v61 = vmax.f32 %v1533_v62, 0.0 }
 0x215   : > { %v1637_v7 = vmax.f32 %v1525_v8, 0.0 }
 0x216   : > { %v2111_v55 = vpack.c.bf16 %v1639_v61, %v1638_v11 }
 0x217   : > { %v2106_v14 = vpack.c.bf16 %v1637_v7, %v1636_v13 }
 0x218   : > { %2175 = vst [vmem:[%s2956_s23 + $0x18] sm:$0xff] %v2111_v55  }
 0x219   : > { %2174 = vst [vmem:[%s2956_s23 + $0x10] sm:$0xff] %v2106_v14  }
 0x21f   : > { %v2462_v63 = vpop.f32.mrb[56].mxu0 }
 0x220   : > { %v1546_v15 = vadd.f32 %v2462_v63, %v2946_v0  ;;  %v1537_v20 = vpop.f32.mrb[57].mxu0 }
 0x221   : > { %v1538_v21 = vadd.f32 %v2946_v0, %v1537_v20  ;;  %v2463_v18 = vpop.f32.mrb[58].mxu0 }
 0x222   : > { %v1549_v23 = vadd.f32 %v2463_v18, %v2946_v0  ;;  %v1540_v24 = vpop.f32.mrb[59].mxu0  ;;  %v1642_v25 = vmax.f32 %v1546_v15, 0.0 }
 0x223   : > { %v1541_v10 = vadd.f32 %v2946_v0, %v1540_v24  ;;  %v1640_v26 = vmax.f32 %v1538_v21, 0.0 }
 0x224   : > { %v1643_v16 = vmax.f32 %v1549_v23, 0.0 }
 0x225   : > { %v1641_v29 = vmax.f32 %v1541_v10, 0.0 }
 0x226   : > { %v2121_v30 = vpack.c.bf16 %v1643_v16, %v1642_v25 }
 0x227   : > { %v2116_v9 = vpack.c.bf16 %v1641_v29, %v1640_v26 }
 0x228   : > { %2177 = vst [vmem:[%s2956_s23 + $0x28] sm:$0xff] %v2121_v30  }
 0x229   : > { %2176 = vst [vmem:[%s2956_s23 + $0x20] sm:$0xff] %v2116_v9  }
 0x22f   : > { %v2466_v31 = vpop.f32.mrb[60].mxu0 }
 0x230   : > { %v1562_v19 = vadd.f32 %v2466_v31, %v2946_v0  ;;  %v1553_v32 = vpop.f32.mrb[61].mxu0 }
 0x231   : > { %v1554_v33 = vadd.f32 %v2946_v0, %v1553_v32  ;;  %v2467_v35 = vpop.f32.mrb[62].mxu0 }
 0x232   : > { %v1565_v36 = vadd.f32 %v2467_v35, %v2946_v0  ;;  %v1556_v42 = vpop.f32.mrb[63].mxu0  ;;  %v1646_v45 = vmax.f32 %v1562_v19, 0.0 }
 0x233   : > { %v1557_v38 = vadd.f32 %v2946_v0, %v1556_v42  ;;  %v1644_v22 = vmax.f32 %v1554_v33, 0.0 }
 0x234   : > { %v1647_v39 = vmax.f32 %v1565_v36, 0.0 }
 0x235   : > { %v1645_v40 = vmax.f32 %v1557_v38, 0.0 }
 0x236   : > { %v2131_v28 = vpack.c.bf16 %v1647_v39, %v1646_v45 }
 0x237   : > { %v2126_v41 = vpack.c.bf16 %v1645_v40, %v1644_v22 }
 0x238   : > { %2179 = vst [vmem:[%s2956_s23 + $0x38] sm:$0xff] %v2131_v28  }
 0x239   : > { %2178 = vst [vmem:[%s2956_s23 + $0x30] sm:$0xff] %v2126_v41  }
 0x23f   : > { %v2470_v52 = vpop.f32.mrb[64].mxu0 }
 0x240   : > { %v1578_v46 = vadd.f32 %v2470_v52, %v2946_v0  ;;  %v1569_v57 = vpop.f32.mrb[65].mxu0 }
 0x241   : > { %v1570_v47 = vadd.f32 %v2946_v0, %v1569_v57  ;;  %v2471_v27 = vpop.f32.mrb[66].mxu0 }
 0x242   : > { %v1581_v48 = vadd.f32 %v2471_v27, %v2946_v0  ;;  %v1572_v34 = vpop.f32.mrb[67].mxu0  ;;  %v1650_v49 = vmax.f32 %v1578_v46, 0.0 }
 0x243   : > { %v1573_v5 = vadd.f32 %v2946_v0, %v1572_v34  ;;  %v1648_v53 = vmax.f32 %v1570_v47, 0.0 }
 0x244   : > { %v1651_v50 = vmax.f32 %v1581_v48, 0.0 }
 0x245   : > { %v1649_v54 = vmax.f32 %v1573_v5, 0.0 }
 0x246   : > { %v2141_v12 = vpack.c.bf16 %v1651_v50, %v1650_v49 }
 0x247   : > { %v2136_v56 = vpack.c.bf16 %v1649_v54, %v1648_v53 }
 0x248   : > { %2181 = vst [vmem:[%s2956_s23 + $0x48] sm:$0xff] %v2141_v12  }
 0x249   : > { %2180 = vst [vmem:[%s2956_s23 + $0x40] sm:$0xff] %v2136_v56  }
 0x24f   : > { %v2474_v17 = vpop.f32.mrb[68].mxu0 }
 0x250   : > { %v1594_v58 = vadd.f32 %v2474_v17, %v2946_v0  ;;  %v1585_v37 = vpop.f32.mrb[69].mxu0 }
 0x251   : > { %v1586_v59 = vadd.f32 %v2946_v0, %v1585_v37  ;;  %v2475_v44 = vpop.f32.mrb[70].mxu0 }
 0x252   : > { %v1597_v60 = vadd.f32 %v2475_v44, %v2946_v0  ;;  %v1588_v1 = vpop.f32.mrb[71].mxu0  ;;  %v1654_v2 = vmax.f32 %v1594_v58, 0.0 }
 0x253   : > { %v1589_v43 = vadd.f32 %v2946_v0, %v1588_v1  ;;  %v1652_v3 = vmax.f32 %v1586_v59, 0.0 }
 0x254   : > { %v1655_v51 = vmax.f32 %v1597_v60, 0.0 }
 0x255   : > { %v1653_v6 = vmax.f32 %v1589_v43, 0.0 }
 0x256   : > { %v2151_v62 = vpack.c.bf16 %v1655_v51, %v1654_v2 }
 0x257   : > { %v2146_v4 = vpack.c.bf16 %v1653_v6, %v1652_v3 }
 0x258   : > { %2183 = vst [vmem:[%s2956_s23 + $0x58] sm:$0xff] %v2151_v62  }
 0x259   : > { %2182 = vst [vmem:[%s2956_s23 + $0x50] sm:$0xff] %v2146_v4  }
 0x25f   : > { %v2478_v8 = vpop.f32.mrb[72].mxu0 }
 0x260   : > { %v1610_v11 = vadd.f32 %v2478_v8, %v2946_v0  ;;  %v1601_v61 = vpop.f32.mrb[73].mxu0 }
 0x261   : > { %v1602_v13 = vadd.f32 %v2946_v0, %v1601_v61  ;;  %v2479_v7 = vpop.f32.mrb[74].mxu0 }
 0x262   : > { %v1613_v55 = vadd.f32 %v2479_v7, %v2946_v0  ;;  %v1604_v14 = vpop.f32.mrb[75].mxu0  ;;  %v1658_v15 = vmax.f32 %v1610_v11, 0.0 }
 0x263   : > { %v1605_v63 = vadd.f32 %v2946_v0, %v1604_v14  ;;  %v1656_v21 = vmax.f32 %v1602_v13, 0.0 }
 0x264   : > { %v1659_v20 = vmax.f32 %v1613_v55, 0.0 }
 0x265   : > { %v1657_v18 = vmax.f32 %v1605_v63, 0.0 }
 0x266   : > { %v2161_v23 = vpack.c.bf16 %v1659_v20, %v1658_v15 }
 0x267   : > { %v2156_v24 = vpack.c.bf16 %v1657_v18, %v1656_v21 }
 0x268   : > { %2185 = vst [vmem:[%s2956_s23 + $0x68] sm:$0xff] %v2161_v23  }
 0x269   : > { %2184 = vst [vmem:[%s2956_s23 + $0x60] sm:$0xff] %v2156_v24  }
 0x26f   : > { %v2482_v10 = vpop.f32.mrb[76].mxu0 }
 0x270   : > { %v1626_v25 = vadd.f32 %v2482_v10, %v2946_v0  ;;  %v1617_v16 = vpop.f32.mrb[77].mxu0 }
 0x271   : > { %v1618_v26 = vadd.f32 %v2946_v0, %v1617_v16  ;;  %v2483_v29 = vpop.f32.mrb[78].mxu0 }
 0x272   : > { %v1629_v30 = vadd.f32 %v2483_v29, %v2946_v0  ;;  %v1620_v9 = vpop.f32.mrb[79].mxu0  ;;  %v1662_v19 = vmax.f32 %v1626_v25, 0.0 }
 0x273   : > { %v1621_v31 = vadd.f32 %v2946_v0, %v1620_v9  ;;  %v1660_v33 = vmax.f32 %v1618_v26, 0.0 }
 0x274   : > { %v1663_v32 = vmax.f32 %v1629_v30, 0.0 }
 0x275   : > { %v1661_v35 = vmax.f32 %v1621_v31, 0.0 }
 0x276   : > { %v2171_v36 = vpack.c.bf16 %v1663_v32, %v1662_v19 }
 0x277   : > { %v2166_v42 = vpack.c.bf16 %v1661_v35, %v1660_v33 }
 0x278   : > { %2187 = vst [vmem:[%s2956_s23 + $0x78] sm:$0xff] %v2171_v36  }
 0x279   : > { %2186 = vst [vmem:[%s2956_s23 + $0x70] sm:$0xff] %v2166_v42  }
 0x27a PF: > { %s14_s17 = sadd.s32 1, %s2682_s17   ;;  %s3016_s15 = smov %s2678_s16 }
 0x27b   : > { %p11_p5 = scmp.ge.s32.totalorder %s14_s17, 4   ;;  %s3017_s16 = smov %s3019_s18 }
 0x27d   :  { %13 = sbr.rel (!%p11_p5) target bundleno = 2 (0x2), region = 77 }

</bundles_post_ra>
